<compile_context>
chip_gen: v6e
topology: v6e:2x2x1
jax: 0.10.0
libtpu: 0.0.40
codegen_flags: <defaults>
</compile_context>

<pallas_src>
import jax
import jax.numpy as jnp
from jax import lax
from jax.experimental import pallas as pl
from jax.experimental.pallas import tpu as pltpu

# bf16 MXU operands (f32 accumulation kept via preferred_element_type).
# Recommended on all current chips; flip to False for a bit-tight f32 check.
USE_BF16_MXU = True

# Channel count at/above which the 9-window lane-concat im2col is replaced by
# 9 accumulated K=C dots (kills the 9x im2col VMEM temp; MXU depth already full).
_ACCUM_DOT_MIN_C = 128


def _zero_border(pad_ref):
    """Zero only the 1-pixel halo border of a (Hp+2, Wp+2, C) scratch."""
    hp2, wp2, c = pad_ref.shape
    z_row = jnp.zeros((1, wp2, c), dtype=pad_ref.dtype)
    pad_ref[pl.ds(0, 1), :, :] = z_row
    pad_ref[pl.ds(hp2 - 1, 1), :, :] = z_row
    z_col = jnp.zeros((hp2, 1, c), dtype=pad_ref.dtype)
    pad_ref[:, pl.ds(0, 1), :] = z_col
    pad_ref[:, pl.ds(wp2 - 1, 1), :] = z_col


def _im2col(pad_ref, hp, wp):
    """9 shifted (hp, wp, C) windows of the halo scratch, lane-concatenated and
    flattened to (hp*wp, 9*C). Ordering matches w_hwio.reshape(9*C, Co)."""
    wins = [pad_ref[pl.ds(dy, hp), pl.ds(dx, wp), :]
            for dy in range(3) for dx in range(3)]
    patches = jnp.concatenate(wins, axis=-1)              # (hp, wp, 9*C)
    return patches.reshape(hp * wp, patches.shape[-1])    # leading-dim merge only


def _conv3x3(pad_ref, w_ref, hp, wp):
    """3x3 SAME conv on the halo scratch -> (hp*wp, Cout) f32 (spatial-major)."""
    cin = pad_ref.shape[2]
    if cin >= _ACCUM_DOT_MIN_C:
        # Deep blocks: 9 accumulated K=C dots; no (hp*wp, 9*C) temp in VMEM.
        cout = w_ref.shape[1]
        acc = jnp.zeros((hp * wp, cout), jnp.float32)
        for t in range(9):
            dy, dx = t // 3, t % 3
            win = pad_ref[pl.ds(dy, hp), pl.ds(dx, wp), :].reshape(hp * wp, cin)
            acc = acc + jnp.dot(win, w_ref[pl.ds(t * cin, cin), :],
                                preferred_element_type=jnp.float32)
        return acc
    # Shallow/mid blocks: single K=9*C matmul on lane-concatenated windows.
    return jnp.dot(_im2col(pad_ref, hp, wp), w_ref[...],
                   preferred_element_type=jnp.float32)


def down_kernel(x_ref, w1_ref, b1_ref, w2_ref, b2_ref, o_ref, pad1_ref, pad2_ref):
    hp = pad1_ref.shape[0] - 2
    wp = pad1_ref.shape[1] - 2
    cin = pad1_ref.shape[2]
    cmid = pad2_ref.shape[2]
    cout = o_ref.shape[1]

    # --- MaxPool2d(kernel_size=2, stride=2): the 4 window phases sit on axis 0.
    xw = x_ref[0]                                          # (4, hp*wp, cin)
    pooled = jnp.maximum(jnp.maximum(xw[0], xw[1]),
                         jnp.maximum(xw[2], xw[3]))        # (hp*wp, cin)

    # --- Conv1 3x3 SAME (BN scale folded into w1) -> bias -> ReLU.
    _zero_border(pad1_ref)                                 # border only; interior
    pad1_ref[pl.ds(1, hp), pl.ds(1, wp), :] = (            # overwritten below
        pooled.reshape(hp, wp, cin).astype(pad1_ref.dtype))
    h = _conv3x3(pad1_ref, w1_ref, hp, wp)                 # (hp*wp, cmid) f32
    h = jnp.maximum(h + b1_ref[...], 0.0)

    # --- Conv2 3x3 SAME -> bias -> ReLU.
    _zero_border(pad2_ref)
    pad2_ref[pl.ds(1, hp), pl.ds(1, wp), :] = (
        h.reshape(hp, wp, cmid).astype(pad2_ref.dtype))
    y = _conv3x3(pad2_ref, w2_ref, hp, wp)                 # (hp*wp, cout) f32
    y = jnp.maximum(y + b2_ref[...], 0.0)

    # Small XLU transpose of the result (not the 9x-larger im2col operand) so
    # the output is channel-major: lane-dense stores + free NCHW reshape outside.
    o_ref[...] = jnp.transpose(y).reshape(1, cout, hp * wp).astype(o_ref.dtype)


@jax.jit
def down_forward(x_nchw, w1, s1, b1, w2, s2, b2):
    N, Cin, H, W = x_nchw.shape
    Hp, Wp = H // 2, W // 2                 # NOTE: requires even H, W (as in UNet)
    Cmid = w1.shape[-1]
    Cout = w2.shape[-1]
    cdt = jnp.bfloat16 if USE_BF16_MXU else jnp.float32

    # Fold the (eval-mode) BatchNorm scale into the conv weights (in f32) and
    # reshape the HWIO weights to im2col form; cast MXU operands to cdt.
    w1m = (w1 * s1.reshape(1, 1, 1, Cmid)).reshape(9 * Cin, Cmid).astype(cdt)
    w2m = (w2 * s2.reshape(1, 1, 1, Cout)).reshape(9 * Cmid, Cout).astype(cdt)
    b1r = b1.reshape(1, Cmid).astype(jnp.float32)
    b2r = b2.reshape(1, Cout).astype(jnp.float32)

    # Single layout pass over x: NCHW -> (N, 4, Hp*Wp, Cin); the 2x2 pool window
    # lands on axis 1, channels land in lanes for the im2col matmuls. Emitted in
    # cdt so the dominant input DMA is halved when bf16 is on.
    xg = x_nchw.reshape(N, Cin, Hp, 2, Wp, 2)
    xg = jnp.transpose(xg, (0, 3, 5, 2, 4, 1)).reshape(N, 4, Hp * Wp, Cin)
    xg = xg.astype(cdt)

    out = pl.pallas_call(
        down_kernel,
        out_shape=jax.ShapeDtypeStruct((N, Cout, Hp * Wp), x_nchw.dtype),
        grid_spec=pltpu.PrefetchScalarGridSpec(
            num_scalar_prefetch=0,
            grid=(N,),
            in_specs=[
                pl.BlockSpec((1, 4, Hp * Wp, Cin), lambda n: (n, 0, 0, 0)),
                pl.BlockSpec((9 * Cin, Cmid), lambda n: (0, 0)),
                pl.BlockSpec((1, Cmid), lambda n: (0, 0)),
                pl.BlockSpec((9 * Cmid, Cout), lambda n: (0, 0)),
                pl.BlockSpec((1, Cout), lambda n: (0, 0)),
            ],
            out_specs=pl.BlockSpec((1, Cout, Hp * Wp), lambda n: (n, 0, 0)),
            scratch_shapes=[
                pltpu.VMEM((Hp + 2, Wp + 2, Cin), cdt),    # conv1 halo scratch
                pltpu.VMEM((Hp + 2, Wp + 2, Cmid), cdt),   # conv2 halo scratch
            ],
        ),
        compiler_params=pltpu.CompilerParams(
            dimension_semantics=("parallel",),
            vmem_limit_bytes=64 * 1024 * 1024),
    )(xg, w1m, b1r, w2m, b2r)

    # Channel-major slab -> NCHW is a free reshape (no transpose on the output).
    return out.reshape(N, Cout, Hp, Wp)


def reference(x_nchw, w1, s1, b1, w2, s2, b2):
    """Plain-JAX reference of Down.forward (eval-mode BN folded to scale/bias)."""
    xp = lax.reduce_window(x_nchw, -jnp.inf, lax.max,
                           (1, 1, 2, 2), (1, 1, 2, 2), "VALID")

    def block(h, w, s, b):
        y = lax.conv_general_dilated(
            h, w, (1, 1), "SAME",
            dimension_numbers=("NCHW", "HWIO", "NCHW"))
        y = y * s[0][None, :, None, None] + b[0][None, :, None, None]
        return jnp.maximum(y, 0.0)

    return block(block(xp, w1, s1, b1), w2, s2, b2)


if __name__ == "__main__":
    key = jax.random.PRNGKey(0)
    (kx, kw1, kw2,
     kg1, kb1, km1, kv1,
     kg2, kb2, km2, kv2) = jax.random.split(key, 11)

    N, Cin, H, W = 2, 4, 16, 16
    Cmid = Cout = 8            # Down(4, 8): DoubleConv mid == out == 8
    eps = 1e-5

    x = jax.random.normal(kx, (N, Cin, H, W), jnp.float32)

    # Conv weights (HWIO layout, bias=False), deterministic init.
    w1 = 0.1 * jax.random.normal(kw1, (3, 3, Cin, Cmid), jnp.float32)
    w2 = 0.1 * jax.random.normal(kw2, (3, 3, Cmid, Cout), jnp.float32)

    # BatchNorm (inference mode) params folded to per-channel scale/bias.
    def bn_fold(kg, kb, km, kv, c):
        gamma = 1.0 + 0.1 * jax.random.normal(kg, (c,), jnp.float32)
        beta = 0.1 * jax.random.normal(kb, (c,), jnp.float32)
        mean = 0.05 * jax.random.normal(km, (c,), jnp.float32)
        var = jnp.abs(jax.random.normal(kv, (c,), jnp.float32)) + 0.5
        scale = gamma / jnp.sqrt(var + eps)
        bias = beta - mean * scale
        return scale.reshape(1, c), bias.reshape(1, c)

    s1, b1 = bn_fold(kg1, kb1, km1, kv1, Cmid)
    s2, b2 = bn_fold(kg2, kb2, km2, kv2, Cout)

    out = down_forward(x, w1, s1, b1, w2, s2, b2)
    out = jax.block_until_ready(out)

    assert out.shape == (N, Cout, H // 2, W // 2), out.shape

    ref = reference(x, w1, s1, b1, w2, s2, b2)
    max_err = float(jnp.max(jnp.abs(out - ref)))
    # bf16 operands (inputs/weights/inter-conv activation) vs the pure-f32
    # reference -> widened tolerance; flip USE_BF16_MXU off for a 1e-3 check.
    tol = 2e-1 if USE_BF16_MXU else 1e-3
    if max_err > tol:
        raise AssertionError(f"mismatch vs reference: max abs err {max_err}")

    print("KERNEL_OK")
</pallas_src>

<mosaic_0001>
module attributes {stable_mosaic.version = 11 : i64} {
  func.func @down_kernel(%arg0: i32, %arg1: memref<1x4x64x4xbf16, #tpu.memory_space<vmem>>, %arg2: memref<36x8xbf16, #tpu.memory_space<vmem>>, %arg3: memref<1x8xf32, #tpu.memory_space<vmem>>, %arg4: memref<72x8xbf16, #tpu.memory_space<vmem>>, %arg5: memref<1x8xf32, #tpu.memory_space<vmem>>, %arg6: memref<1x8x64xf32, #tpu.memory_space<vmem>>, %arg7: memref<10x10x4xbf16, #tpu.memory_space<vmem>>, %arg8: memref<10x10x8xbf16, #tpu.memory_space<vmem>>) attributes {dimension_semantics = [#tpu.dimension_semantics<parallel>], iteration_bounds = array<i64: 2>, scalar_prefetch = 0 : i64, scratch_operands = 2 : i64, tpu.core_type = #tpu.core_type<tc>, window_params = [{transform_indices = @transform_0, window_bounds = array<i64: 1, 4, 64, 4>}, {pipeline_mode = #tpu.pipeline_mode<synchronous>, transform_indices = @transform_1, window_bounds = array<i64: 36, 8>}, {pipeline_mode = #tpu.pipeline_mode<synchronous>, transform_indices = @transform_2, window_bounds = array<i64: 1, 8>}, {pipeline_mode = #tpu.pipeline_mode<synchronous>, transform_indices = @transform_3, window_bounds = array<i64: 72, 8>}, {pipeline_mode = #tpu.pipeline_mode<synchronous>, transform_indices = @transform_4, window_bounds = array<i64: 1, 8>}, {transform_indices = @transform_5, window_bounds = array<i64: 1, 8, 64>}]} {
    %c0 = arith.constant 0 : index
    %c0_0 = arith.constant 0 : index
    %c0_1 = arith.constant 0 : index
    %c0_2 = arith.constant 0 : index
    %0 = vector.load %arg1[%c0, %c0_0, %c0_1, %c0_2] : memref<1x4x64x4xbf16, #tpu.memory_space<vmem>>, vector<1x4x64x4xbf16>
    %1 = vector.shape_cast %0 : vector<1x4x64x4xbf16> to vector<4x64x4xbf16>
    %2 = vector.extract_strided_slice %1 {offsets = [0, 0, 0], sizes = [1, 64, 4], strides = [1, 1, 1]} : vector<4x64x4xbf16> to vector<1x64x4xbf16>
    %3 = vector.shape_cast %2 : vector<1x64x4xbf16> to vector<64x4xbf16>
    %4 = vector.extract_strided_slice %1 {offsets = [1, 0, 0], sizes = [1, 64, 4], strides = [1, 1, 1]} : vector<4x64x4xbf16> to vector<1x64x4xbf16>
    %5 = vector.shape_cast %4 : vector<1x64x4xbf16> to vector<64x4xbf16>
    %6 = arith.maximumf %3, %5 : vector<64x4xbf16>
    %7 = vector.extract_strided_slice %1 {offsets = [2, 0, 0], sizes = [1, 64, 4], strides = [1, 1, 1]} : vector<4x64x4xbf16> to vector<1x64x4xbf16>
    %8 = vector.shape_cast %7 : vector<1x64x4xbf16> to vector<64x4xbf16>
    %9 = vector.extract_strided_slice %1 {offsets = [3, 0, 0], sizes = [1, 64, 4], strides = [1, 1, 1]} : vector<4x64x4xbf16> to vector<1x64x4xbf16>
    %10 = vector.shape_cast %9 : vector<1x64x4xbf16> to vector<64x4xbf16>
    %11 = arith.maximumf %8, %10 : vector<64x4xbf16>
    %12 = arith.maximumf %6, %11 : vector<64x4xbf16>
    %cst = arith.constant 0.000000e+00 : bf16
    %13 = vector.broadcast %cst : bf16 to vector<1x10x4xbf16>
    %c0_3 = arith.constant 0 : index
    %c0_4 = arith.constant 0 : index
    %c0_5 = arith.constant 0 : index
    %14 = vector.load %arg7[%c0_3, %c0_4, %c0_5] : memref<10x10x4xbf16, #tpu.memory_space<vmem>>, vector<1x10x4xbf16>
    tpu.vector_store %arg7[%c0_3, %c0_4, %c0_5], %13 {strides = array<i32>} : memref<10x10x4xbf16, #tpu.memory_space<vmem>>, vector<1x10x4xbf16>,
    %c9 = arith.constant 9 : index
    %c0_6 = arith.constant 0 : index
    %c0_7 = arith.constant 0 : index
    %15 = vector.load %arg7[%c9, %c0_6, %c0_7] : memref<10x10x4xbf16, #tpu.memory_space<vmem>>, vector<1x10x4xbf16>
    tpu.vector_store %arg7[%c9, %c0_6, %c0_7], %13 {strides = array<i32>} : memref<10x10x4xbf16, #tpu.memory_space<vmem>>, vector<1x10x4xbf16>,
    %cst_8 = arith.constant 0.000000e+00 : bf16
    %16 = vector.broadcast %cst_8 : bf16 to vector<10x1x4xbf16>
    %c0_9 = arith.constant 0 : index
    %c0_10 = arith.constant 0 : index
    %c0_11 = arith.constant 0 : index
    %17 = vector.load %arg7[%c0_9, %c0_10, %c0_11] : memref<10x10x4xbf16, #tpu.memory_space<vmem>>, vector<10x1x4xbf16>
    tpu.vector_store %arg7[%c0_9, %c0_10, %c0_11], %16 {strides = array<i32>} : memref<10x10x4xbf16, #tpu.memory_space<vmem>>, vector<10x1x4xbf16>,
    %c0_12 = arith.constant 0 : index
    %c9_13 = arith.constant 9 : index
    %c0_14 = arith.constant 0 : index
    %18 = vector.load %arg7[%c0_12, %c9_13, %c0_14] : memref<10x10x4xbf16, #tpu.memory_space<vmem>>, vector<10x1x4xbf16>
    tpu.vector_store %arg7[%c0_12, %c9_13, %c0_14], %16 {strides = array<i32>} : memref<10x10x4xbf16, #tpu.memory_space<vmem>>, vector<10x1x4xbf16>,
    %19 = vector.shape_cast %12 : vector<64x4xbf16> to vector<8x8x4xbf16>
    %c1 = arith.constant 1 : index
    %c1_15 = arith.constant 1 : index
    %c0_16 = arith.constant 0 : index
    %20 = vector.load %arg7[%c1, %c1_15, %c0_16] : memref<10x10x4xbf16, #tpu.memory_space<vmem>>, vector<8x8x4xbf16>
    tpu.vector_store %arg7[%c1, %c1_15, %c0_16], %19 {strides = array<i32>} : memref<10x10x4xbf16, #tpu.memory_space<vmem>>, vector<8x8x4xbf16>,
    %c0_17 = arith.constant 0 : index
    %c0_18 = arith.constant 0 : index
    %c0_19 = arith.constant 0 : index
    %21 = vector.load %arg7[%c0_17, %c0_18, %c0_19] : memref<10x10x4xbf16, #tpu.memory_space<vmem>>, vector<8x8x4xbf16>
    %c0_20 = arith.constant 0 : index
    %c1_21 = arith.constant 1 : index
    %c0_22 = arith.constant 0 : index
    %22 = vector.load %arg7[%c0_20, %c1_21, %c0_22] : memref<10x10x4xbf16, #tpu.memory_space<vmem>>, vector<8x8x4xbf16>
    %c0_23 = arith.constant 0 : index
    %c2 = arith.constant 2 : index
    %c0_24 = arith.constant 0 : index
    %23 = vector.load %arg7[%c0_23, %c2, %c0_24] : memref<10x10x4xbf16, #tpu.memory_space<vmem>>, vector<8x8x4xbf16>
    %c1_25 = arith.constant 1 : index
    %c0_26 = arith.constant 0 : index
    %c0_27 = arith.constant 0 : index
    %24 = vector.load %arg7[%c1_25, %c0_26, %c0_27] : memref<10x10x4xbf16, #tpu.memory_space<vmem>>, vector<8x8x4xbf16>
    %c1_28 = arith.constant 1 : index
    %c1_29 = arith.constant 1 : index
    %c0_30 = arith.constant 0 : index
    %25 = vector.load %arg7[%c1_28, %c1_29, %c0_30] : memref<10x10x4xbf16, #tpu.memory_space<vmem>>, vector<8x8x4xbf16>
    %c1_31 = arith.constant 1 : index
    %c2_32 = arith.constant 2 : index
    %c0_33 = arith.constant 0 : index
    %26 = vector.load %arg7[%c1_31, %c2_32, %c0_33] : memref<10x10x4xbf16, #tpu.memory_space<vmem>>, vector<8x8x4xbf16>
    %c2_34 = arith.constant 2 : index
    %c0_35 = arith.constant 0 : index
    %c0_36 = arith.constant 0 : index
    %27 = vector.load %arg7[%c2_34, %c0_35, %c0_36] : memref<10x10x4xbf16, #tpu.memory_space<vmem>>, vector<8x8x4xbf16>
    %c2_37 = arith.constant 2 : index
    %c1_38 = arith.constant 1 : index
    %c0_39 = arith.constant 0 : index
    %28 = vector.load %arg7[%c2_37, %c1_38, %c0_39] : memref<10x10x4xbf16, #tpu.memory_space<vmem>>, vector<8x8x4xbf16>
    %c2_40 = arith.constant 2 : index
    %c2_41 = arith.constant 2 : index
    %c0_42 = arith.constant 0 : index
    %29 = vector.load %arg7[%c2_40, %c2_41, %c0_42] : memref<10x10x4xbf16, #tpu.memory_space<vmem>>, vector<8x8x4xbf16>
    %30 = tpu.concatenate %21, %22, %23, %24, %25, %26, %27, %28, %29 in 2 : vector<8x8x4xbf16>, vector<8x8x4xbf16>, vector<8x8x4xbf16>, vector<8x8x4xbf16>, vector<8x8x4xbf16>, vector<8x8x4xbf16>, vector<8x8x4xbf16>, vector<8x8x4xbf16>, vector<8x8x4xbf16> -> vector<8x8x36xbf16>
    %31 = vector.shape_cast %30 : vector<8x8x36xbf16> to vector<64x36xbf16>
    %c0_43 = arith.constant 0 : index
    %c0_44 = arith.constant 0 : index
    %32 = vector.load %arg2[%c0_43, %c0_44] : memref<36x8xbf16, #tpu.memory_space<vmem>>, vector<36x8xbf16>
    %cst_45 = arith.constant dense<0.000000e+00> : vector<64x8xf32>
    %33 = tpu.matmul %31, %32, %cst_45 {dimension_numbers = #tpu.dot_dimension_numbers<[1], [0], [0], [1], [0, 0, 1, 1], [], []>} : vector<64x36xbf16>, vector<36x8xbf16>, vector<64x8xf32> -> vector<64x8xf32>
    %c0_46 = arith.constant 0 : index
    %c0_47 = arith.constant 0 : index
    %34 = vector.load %arg3[%c0_46, %c0_47] : memref<1x8xf32, #tpu.memory_space<vmem>>, vector<1x8xf32>
    %35 = vector.broadcast %34 : vector<1x8xf32> to vector<64x8xf32>
    %36 = arith.addf %33, %35 : vector<64x8xf32>
    %cst_48 = arith.constant 0.000000e+00 : f32
    %37 = vector.broadcast %cst_48 : f32 to vector<64x8xf32>
    %38 = arith.maximumf %36, %37 : vector<64x8xf32>
    %cst_49 = arith.constant 0.000000e+00 : bf16
    %39 = vector.broadcast %cst_49 : bf16 to vector<1x10x8xbf16>
    %c0_50 = arith.constant 0 : index
    %c0_51 = arith.constant 0 : index
    %c0_52 = arith.constant 0 : index
    %40 = vector.load %arg8[%c0_50, %c0_51, %c0_52] : memref<10x10x8xbf16, #tpu.memory_space<vmem>>, vector<1x10x8xbf16>
    tpu.vector_store %arg8[%c0_50, %c0_51, %c0_52], %39 {strides = array<i32>} : memref<10x10x8xbf16, #tpu.memory_space<vmem>>, vector<1x10x8xbf16>,
    %c9_53 = arith.constant 9 : index
    %c0_54 = arith.constant 0 : index
    %c0_55 = arith.constant 0 : index
    %41 = vector.load %arg8[%c9_53, %c0_54, %c0_55] : memref<10x10x8xbf16, #tpu.memory_space<vmem>>, vector<1x10x8xbf16>
    tpu.vector_store %arg8[%c9_53, %c0_54, %c0_55], %39 {strides = array<i32>} : memref<10x10x8xbf16, #tpu.memory_space<vmem>>, vector<1x10x8xbf16>,
    %cst_56 = arith.constant 0.000000e+00 : bf16
    %42 = vector.broadcast %cst_56 : bf16 to vector<10x1x8xbf16>
    %c0_57 = arith.constant 0 : index
    %c0_58 = arith.constant 0 : index
    %c0_59 = arith.constant 0 : index
    %43 = vector.load %arg8[%c0_57, %c0_58, %c0_59] : memref<10x10x8xbf16, #tpu.memory_space<vmem>>, vector<10x1x8xbf16>
    tpu.vector_store %arg8[%c0_57, %c0_58, %c0_59], %42 {strides = array<i32>} : memref<10x10x8xbf16, #tpu.memory_space<vmem>>, vector<10x1x8xbf16>,
    %c0_60 = arith.constant 0 : index
    %c9_61 = arith.constant 9 : index
    %c0_62 = arith.constant 0 : index
    %44 = vector.load %arg8[%c0_60, %c9_61, %c0_62] : memref<10x10x8xbf16, #tpu.memory_space<vmem>>, vector<10x1x8xbf16>
    tpu.vector_store %arg8[%c0_60, %c9_61, %c0_62], %42 {strides = array<i32>} : memref<10x10x8xbf16, #tpu.memory_space<vmem>>, vector<10x1x8xbf16>,
    %45 = vector.shape_cast %38 : vector<64x8xf32> to vector<8x8x8xf32>
    %46 = arith.truncf %45 : vector<8x8x8xf32> to vector<8x8x8xbf16>
    %c1_63 = arith.constant 1 : index
    %c1_64 = arith.constant 1 : index
    %c0_65 = arith.constant 0 : index
    %47 = vector.load %arg8[%c1_63, %c1_64, %c0_65] : memref<10x10x8xbf16, #tpu.memory_space<vmem>>, vector<8x8x8xbf16>
    tpu.vector_store %arg8[%c1_63, %c1_64, %c0_65], %46 {strides = array<i32>} : memref<10x10x8xbf16, #tpu.memory_space<vmem>>, vector<8x8x8xbf16>,
    %c0_66 = arith.constant 0 : index
    %c0_67 = arith.constant 0 : index
    %c0_68 = arith.constant 0 : index
    %48 = vector.load %arg8[%c0_66, %c0_67, %c0_68] : memref<10x10x8xbf16, #tpu.memory_space<vmem>>, vector<8x8x8xbf16>
    %c0_69 = arith.constant 0 : index
    %c1_70 = arith.constant 1 : index
    %c0_71 = arith.constant 0 : index
    %49 = vector.load %arg8[%c0_69, %c1_70, %c0_71] : memref<10x10x8xbf16, #tpu.memory_space<vmem>>, vector<8x8x8xbf16>
    %c0_72 = arith.constant 0 : index
    %c2_73 = arith.constant 2 : index
    %c0_74 = arith.constant 0 : index
    %50 = vector.load %arg8[%c0_72, %c2_73, %c0_74] : memref<10x10x8xbf16, #tpu.memory_space<vmem>>, vector<8x8x8xbf16>
    %c1_75 = arith.constant 1 : index
    %c0_76 = arith.constant 0 : index
    %c0_77 = arith.constant 0 : index
    %51 = vector.load %arg8[%c1_75, %c0_76, %c0_77] : memref<10x10x8xbf16, #tpu.memory_space<vmem>>, vector<8x8x8xbf16>
    %c1_78 = arith.constant 1 : index
    %c1_79 = arith.constant 1 : index
    %c0_80 = arith.constant 0 : index
    %52 = vector.load %arg8[%c1_78, %c1_79, %c0_80] : memref<10x10x8xbf16, #tpu.memory_space<vmem>>, vector<8x8x8xbf16>
    %c1_81 = arith.constant 1 : index
    %c2_82 = arith.constant 2 : index
    %c0_83 = arith.constant 0 : index
    %53 = vector.load %arg8[%c1_81, %c2_82, %c0_83] : memref<10x10x8xbf16, #tpu.memory_space<vmem>>, vector<8x8x8xbf16>
    %c2_84 = arith.constant 2 : index
    %c0_85 = arith.constant 0 : index
    %c0_86 = arith.constant 0 : index
    %54 = vector.load %arg8[%c2_84, %c0_85, %c0_86] : memref<10x10x8xbf16, #tpu.memory_space<vmem>>, vector<8x8x8xbf16>
    %c2_87 = arith.constant 2 : index
    %c1_88 = arith.constant 1 : index
    %c0_89 = arith.constant 0 : index
    %55 = vector.load %arg8[%c2_87, %c1_88, %c0_89] : memref<10x10x8xbf16, #tpu.memory_space<vmem>>, vector<8x8x8xbf16>
    %c2_90 = arith.constant 2 : index
    %c2_91 = arith.constant 2 : index
    %c0_92 = arith.constant 0 : index
    %56 = vector.load %arg8[%c2_90, %c2_91, %c0_92] : memref<10x10x8xbf16, #tpu.memory_space<vmem>>, vector<8x8x8xbf16>
    %57 = tpu.concatenate %48, %49, %50, %51, %52, %53, %54, %55, %56 in 2 : vector<8x8x8xbf16>, vector<8x8x8xbf16>, vector<8x8x8xbf16>, vector<8x8x8xbf16>, vector<8x8x8xbf16>, vector<8x8x8xbf16>, vector<8x8x8xbf16>, vector<8x8x8xbf16>, vector<8x8x8xbf16> -> vector<8x8x72xbf16>
    %58 = vector.shape_cast %57 : vector<8x8x72xbf16> to vector<64x72xbf16>
    %c0_93 = arith.constant 0 : index
    %c0_94 = arith.constant 0 : index
    %59 = vector.load %arg4[%c0_93, %c0_94] : memref<72x8xbf16, #tpu.memory_space<vmem>>, vector<72x8xbf16>
    %cst_95 = arith.constant dense<0.000000e+00> : vector<64x8xf32>
    %60 = tpu.matmul %58, %59, %cst_95 {dimension_numbers = #tpu.dot_dimension_numbers<[1], [0], [0], [1], [0, 0, 1, 1], [], []>} : vector<64x72xbf16>, vector<72x8xbf16>, vector<64x8xf32> -> vector<64x8xf32>
    %c0_96 = arith.constant 0 : index
    %c0_97 = arith.constant 0 : index
    %61 = vector.load %arg5[%c0_96, %c0_97] : memref<1x8xf32, #tpu.memory_space<vmem>>, vector<1x8xf32>
    %62 = vector.broadcast %61 : vector<1x8xf32> to vector<64x8xf32>
    %63 = arith.addf %60, %62 : vector<64x8xf32>
    %cst_98 = arith.constant 0.000000e+00 : f32
    %64 = vector.broadcast %cst_98 : f32 to vector<64x8xf32>
    %65 = arith.maximumf %63, %64 : vector<64x8xf32>
    %66 = tpu.transpose %65, [1, 0] : vector<64x8xf32> -> vector<8x64xf32>
    %67 = vector.shape_cast %66 : vector<8x64xf32> to vector<1x8x64xf32>
    %c0_99 = arith.constant 0 : index
    %c0_100 = arith.constant 0 : index
    %c0_101 = arith.constant 0 : index
    %68 = vector.load %arg6[%c0_99, %c0_100, %c0_101] : memref<1x8x64xf32, #tpu.memory_space<vmem>>, vector<1x8x64xf32>
    tpu.vector_store %arg6[%c0_99, %c0_100, %c0_101], %67 {strides = array<i32>} : memref<1x8x64xf32, #tpu.memory_space<vmem>>, vector<1x8x64xf32>,
    return
  }
  func.func @transform_0(%arg0: i32) -> (i32, i32, i32, i32) {
    %c0_i32 = arith.constant 0 : i32
    %c0_i32_0 = arith.constant 0 : i32
    %c0_i32_1 = arith.constant 0 : i32
    %c0_i32_2 = arith.constant 0 : i32
    return %arg0, %c0_i32, %c0_i32_0, %c0_i32_1 : i32, i32, i32, i32
  }
  func.func @transform_1(%arg0: i32) -> (i32, i32) {
    %c0_i32 = arith.constant 0 : i32
    %c0_i32_0 = arith.constant 0 : i32
    %c0_i32_1 = arith.constant 0 : i32
    return %c0_i32, %c0_i32_0 : i32, i32
  }
  func.func @transform_2(%arg0: i32) -> (i32, i32) {
    %c0_i32 = arith.constant 0 : i32
    %c0_i32_0 = arith.constant 0 : i32
    %c0_i32_1 = arith.constant 0 : i32
    return %c0_i32, %c0_i32_0 : i32, i32
  }
  func.func @transform_3(%arg0: i32) -> (i32, i32) {
    %c0_i32 = arith.constant 0 : i32
    %c0_i32_0 = arith.constant 0 : i32
    %c0_i32_1 = arith.constant 0 : i32
    return %c0_i32, %c0_i32_0 : i32, i32
  }
  func.func @transform_4(%arg0: i32) -> (i32, i32) {
    %c0_i32 = arith.constant 0 : i32
    %c0_i32_0 = arith.constant 0 : i32
    %c0_i32_1 = arith.constant 0 : i32
    return %c0_i32, %c0_i32_0 : i32, i32
  }
  func.func @transform_5(%arg0: i32) -> (i32, i32, i32) {
    %c0_i32 = arith.constant 0 : i32
    %c0_i32_0 = arith.constant 0 : i32
    %c0_i32_1 = arith.constant 0 : i32
    return %arg0, %c0_i32, %c0_i32_0 : i32, i32, i32
  }
}

</mosaic_0001>

<bundles_post_ra>
// kernel: down_forward.1
= control target key start
LH: loop header
LB: loop body
LE: loop exit
PB: predicated region body
PF: predicated region fallthrough
CT: control target
= control target key end

     0   :  { %s3017_s18 = smov 0   ;;  %s3835_s0 = inlined_call_operand.vmem [shape: bf16[2,4,64,4], index: 0, kind: input, shape index: {}]   ;;  %s3836_s1 = inlined_call_operand.vmem [shape: bf16[36,8], index: 1, kind: input, shape index: {}]   ;;  %s3837_s2 = inlined_call_operand.vmem [shape: f32[1,8], index: 2, kind: input, shape index: {}]   ;;  %s3838_s3 = inlined_call_operand.vmem [shape: bf16[72,8], index: 3, kind: input, shape index: {}]   ;;  %s3839_s4 = inlined_call_operand.vmem [shape: f32[1,8], index: 4, kind: input, shape index: {}]   ;;  %s3840_s5 = inlined_call_operand.vmem [shape: f32[2,8,64], index: 5, kind: output, shape index: {}]  }
   0x1 LB: > { %s2578_s19 = sadd.s32 4294967295, %s2972_s18   ;;  %p2582_p0 = scmp.ge.s32.totalorder %s2972_s18, 1  ;;  %s2972_s18 = sphi %s3017_s18, %s15_s18  }
   0x2   : > { %p187_p1 = scmp.lt.s32.totalorder %s2972_s18, 3 }
   0x4   : > { %p188_p2 = pnand %p2582_p0, %p187_p1 }
   0x5   : > { %p214_p3 = scmp.lt.s32.totalorder (!%p188_p2), %s2578_s19, 1  ;;  %s2975_s24 = smov (!%p188_p2), 8  }
   0x6   : > { %191 = sbr.rel (%p188_p2) target bundleno = 1003 (0x3eb), region = 40  ;;  %s2976_s25 = smov (!%p188_p2), 4  }
   0x7   : > { %s2977_s26 = smov (!%p188_p2), 12   ;;  %s2978_s27 = smov (!%p188_p2), 20  }
   0x8   : > { %s2979_s28 = smov (!%p188_p2), 16   ;;  %s2980_s29 = smov (!%p188_p2), 24  }
   0x9   : > { %s2981_s30 = smov (!%p188_p2), 28   ;;  %s2982_s6 = smov (!%p188_p2), 32  }
   0xa   : > { %s2983_s13 = smov (!%p188_p2), 48   ;;  %s2984_s14 = smov (!%p188_p2), 56  }
   0xb   : > { %vm280_vm0 = vcmask 27648   ;;  %vm282_vm1 = vcmask 24576   ;;  %vm288_vm2 = vsmask.f32 256  ;;  %v2974_v0 = vmov 0   ;;  %s3854_s19 = smov (!%p214_p3, %s2578_s19), 1 }
   0xc   : > { %281 = vst.msk [vmem:[#allocation2] sm:$0xf] %vm280_vm0, %v2974_v0  ;;  %vm3029_vm3 = vmand %vm282_vm1, %vm288_vm2  ;;  %vm320_vm4 = vsmask.f32 7938  ;;  %v296_v2 = vld [vmem:[#allocation2 + $0x10] sm:$0x1] }
   0xd   : > { %283 = vst.msk [vmem:[#allocation2 + $0x4] sm:$0x1] %vm282_vm1, %v2974_v0  ;;  %286 = vst.msk [vmem:[#allocation2 + $0x4c] sm:$0x1] %vm282_vm1, %v2974_v0  ;;  %v297_v4 = vsel %vm3029_vm3, 0, %v296_v2  ;;  %s2750_s20 = sshll.u32 %s3854_s19, 7 }
   0xe   : > { %285 = vst.msk [vmem:[#allocation2 + $0x48] sm:$0xf] %vm280_vm0, %v2974_v0  ;;  %vm3037_vm5 = vmand %vm282_vm1, %vm320_vm4  ;;  %v328_v5 = vld [vmem:[#allocation2 + $0x14] sm:$0x1]  ;;  %v293_v6 = vld [vmem:[#allocation2 + $0x8] sm:$0x1]  ;;  %s3059_s23 = scalar_lea.vmem %s3835_s0, %s2750_s20 }
   0xf   : > { %298 = vst [vmem:[#allocation2 + $0x10] sm:$0x1] %v297_v4  ;;  %v329_v7 = vsel %vm3037_vm5, 0, %v328_v5  ;;  %v294_v8 = vsel %vm3029_vm3, 0, %v293_v6  ;;  %v302_v9 = vld [vmem:[#allocation2 + $0x20] sm:$0x1]  ;;  %vm3085_vm6 = vmand %vm280_vm0, %vm320_vm4 }
  0x10   : > { %330 = vst [vmem:[#allocation2 + $0x14] sm:$0x1] %v329_v7  ;;  %295 = vst [vmem:[#allocation2 + $0x8] sm:$0x1] %v294_v8  ;;  %v303_v10 = vsel %vm3029_vm3, 0, %v302_v9  ;;  %vm1288_vm7 = vcmask 1041408  }
  0x11   : > { %v334_v11 = vld [vmem:[#allocation2 + $0x24] sm:$0x1]  ;;  %v299_v12 = vld [vmem:[#allocation2 + $0x18] sm:$0x1]  ;;  %304 = vst [vmem:[#allocation2 + $0x20] sm:$0x1] %v303_v10 }
  0x12   : > { %v335_v13 = vsel %vm3037_vm5, 0, %v334_v11  ;;  %v300_v14 = vsel %vm3029_vm3, 0, %v299_v12  ;;  %v331_v15 = vld [vmem:[#allocation2 + $0x1c] sm:$0x1]  ;;  %v225_v17 = vld [vmem:[%s3059_s23 + $0x4] sm:$0xf] }
  0x13   : > { %336 = vst [vmem:[#allocation2 + $0x24] sm:$0x1] %v335_v13  ;;  %301 = vst [vmem:[#allocation2 + $0x18] sm:$0x1] %v300_v14  ;;  %v332_v16 = vsel %vm3037_vm5, 0, %v331_v15  ;;  %vm1084_vm8 = vcmask 31744  }
  0x14   : > { %v233_v18 = vld [vmem:[%s3059_s23 + $0x24] sm:$0xf]  ;;  %333 = vst [vmem:[#allocation2 + $0x1c] sm:$0x1] %v332_v16  ;;  %v290_v21 = vld [vmem:[#allocation2] sm:$0x1] }
  0x15   : > { %v241_v19 = vld [vmem:[%s3059_s23 + $0x44] sm:$0xf]  ;;  %v257_v22 = vmax.bf16 %v233_v18, %v225_v17  ;;  %v291_v24 = vsel %vm3029_vm3, 0, %v290_v21  ;;  %v224_v26 = vld [vmem:[%s3059_s23] sm:$0xf]  ;;  %vm1109_vm9 = vcmask 64512  }
  0x16   : > { %v322_v20 = vld [vmem:[#allocation2 + $0x4] sm:$0x1]  ;;  %292 = vst [vmem:[#allocation2] sm:$0x1] %v291_v24  ;;  %v232_v28 = vld [vmem:[%s3059_s23 + $0x20] sm:$0xf] }
  0x17   : > { %v323_v23 = vsel %vm3037_vm5, 0, %v322_v20  ;;  %v249_v25 = vld [vmem:[%s3059_s23 + $0x64] sm:$0xf]  ;;  %v240_v29 = vld [vmem:[%s3059_s23 + $0x40] sm:$0xf]  ;;  %v256_v31 = vmax.bf16 %v232_v28, %v224_v26  ;;  %vm1126_vm10 = vcmask 97280  }
  0x18   : > { %324 = vst [vmem:[#allocation2 + $0x4] sm:$0x1] %v323_v23  ;;  %v265_v27 = vmax.bf16 %v249_v25, %v241_v19  ;;  %v248_v30 = vld [vmem:[%s3059_s23 + $0x60] sm:$0xf]  ;;  %v227_v34 = vld [vmem:[%s3059_s23 + $0xc] sm:$0xf] }
  0x19   : > { %v264_v33 = vmax.bf16 %v248_v30, %v240_v29  ;;  %v235_v35 = vld [vmem:[%s3059_s23 + $0x2c] sm:$0xf]  ;;  %v305_v40 = vld [vmem:[#allocation2 + $0x28] sm:$0x1]  ;;  %v499_v47 = vld [vmem:[#allocation2] sm:$0xe] }
  0x1a   : > { %v273_v32 = vmax.bf16 %v265_v27, %v257_v22  ;;  %v243_v36 = vld [vmem:[%s3059_s23 + $0x4c] sm:$0xf]  ;;  %v259_v38 = vmax.bf16 %v235_v35, %v227_v34  ;;  %v226_v45 = vld [vmem:[%s3059_s23 + $0x8] sm:$0xf]  ;;  %v441_v52 = vld [vmem:[#allocation2 + $0x10] sm:$0xf] }
  0x1b   : > { %v251_v37 = vld [vmem:[%s3059_s23 + $0x6c] sm:$0xf]  ;;  %v272_v43 = vmax.bf16 %v264_v33, %v256_v31  ;;  %v234_v46 = vld [vmem:[%s3059_s23 + $0x28] sm:$0xf]  ;;  %v306_v61 = vsel %vm3029_vm3, 0, %v305_v40  ;;  %vm1143_vm11 = vcmask 130048  }
  0x1c   : > { %v325_v39 = vld [vmem:[#allocation2 + $0xc] sm:$0x1]  ;;  %v361_v41 = vshrl.u32 %v273_v32, 16  ;;  %v364_v42 = vshll.u32 %v273_v32, 16  ;;  %v267_v44 = vmax.bf16 %v251_v37, %v243_v36  ;;  %v242_v48 = vld [vmem:[%s3059_s23 + $0x48] sm:$0xf]  ;;  %v258_v50 = vmax.bf16 %v234_v46, %v226_v45 }
  0x1d   : > { %v250_v49 = vld [vmem:[%s3059_s23 + $0x68] sm:$0xf]  ;;  %v353_v53 = vshrl.u32 %v272_v43, 16  ;;  %v356_v54 = vshll.u32 %v272_v43, 16  ;;  %v483_v58 = vld [vmem:[#allocation2] sm:$0xf] }
  0x1e   : > { %v363_v51 = vrot.slane %v361_v41, 7  ;;  %v275_v55 = vmax.bf16 %v267_v44, %v259_v38  ;;  %v266_v59 = vmax.bf16 %v250_v49, %v242_v48  ;;  %v326_v60 = vsel %vm3037_vm5, 0, %v325_v39  ;;  %v444_v5 = vld [vmem:[#allocation2 + $0x14] sm:$0x1]  ;;  %307 = vst [vmem:[#allocation2 + $0x28] sm:$0x1] %v306_v61 }
  0x1f   : > { %v491_v57 = vld [vmem:[#allocation2 + $0x4] sm:$0x1]  ;;  %327 = vst [vmem:[#allocation2 + $0xc] sm:$0x1] %v326_v60  ;;  %v355_v6 = vrot.slane %v353_v53, 7  ;;  %vm1160_vm12 = vcmask 162816  }
  0x20   : > { %v2594_v62 = vcombine.low %v499_v47, %v491_v57  ;;  %v2586_v63 = vcombine.low %v483_v58, %v491_v57  ;;  %v366_v2 = vor.u32 %v364_v42, %v363_v51  ;;  %v367_v4 = vrot.slane %v363_v51, 4  ;;  %v435_v14 = vld [vmem:[#allocation2 + $0x8] sm:$0xf]  ;;  %v453_v18 = vld [vmem:[#allocation2 + $0x20] sm:$0xf]  ;;  %s2985_s17 = smov 64  }
  0x21   : > { %v377_v7 = vshrl.u32 %v275_v55, 16  ;;  %v380_v8 = vshll.u32 %v275_v55, 16  ;;  %v274_v9 = vmax.bf16 %v266_v59, %v258_v50  ;;  %v358_v16 = vor.u32 %v356_v54, %v355_v6  ;;  %v337_v20 = vld [vmem:[#allocation2 + $0x2c] sm:$0x1]  ;;  %v456_v22 = vld [vmem:[#allocation2 + $0x24] sm:$0x1] }
  0x22   : > { %v692_v10 = vrot.slane %v2594_v62, 1  ;;  %v599_v11 = vshll.u32 %v2586_v63, 16  ;;  %v597_v12 = vshrl.u32 %v2586_v63, 16  ;;  %v442_v13 = vsel %vm3085_vm6, %v366_v2, %v441_v52  ;;  %v447_v29 = vld [vmem:[#allocation2 + $0x18] sm:$0xf]  ;;  %s2986_s20 = smov 40  }
  0x23   : > { %443 = vst [vmem:[#allocation2 + $0x10] sm:$0xf] %v442_v13  ;;  %v445_v15 = vsel %vm3029_vm3, %v367_v4, %v444_v5  ;;  %v379_v17 = vrot.slane %v377_v7, 7  ;;  %v369_v19 = vshrl.u32 %v274_v9, 16  ;;  %v372_v23 = vshll.u32 %v274_v9, 16 }
  0x24   : > { %700 = vrot.lane.b32.xlu0 %v692_v10, %s2975_s24  ;;  %v601_v21 = vrot.slane %v599_v11, 1  ;;  %446 = vst [vmem:[#allocation2 + $0x14] sm:$0x1] %v445_v15  ;;  %v359_v24 = vrot.slane %v355_v6, 4  ;;  %v436_v25 = vsel %vm3085_vm6, %v358_v16, %v435_v14  ;;  %v450_v30 = vld [vmem:[#allocation2 + $0x1c] sm:$0x1] }
  0x25   : > { %v382_v26 = vor.u32 %v380_v8, %v379_v17  ;;  %v383_v27 = vrot.slane %v379_v17, 4  ;;  %v371_v28 = vrot.slane %v369_v19, 7  ;;  %437 = vst [vmem:[#allocation2 + $0x8] sm:$0xf] %v436_v25  ;;  %v338_v32 = vsel %vm3037_vm5, 0, %v337_v20 }
  0x26   : > { %v602_v31 = vor.u32 %v601_v21, %v597_v12  ;;  %v308_v33 = vld [vmem:[#allocation2 + $0x30] sm:$0x1]  ;;  %v340_v34 = vld [vmem:[#allocation2 + $0x34] sm:$0x1]  ;;  %v438_v39 = vld [vmem:[#allocation2 + $0xc] sm:$0x1] }
  0x27   : > { %v454_v35 = vsel %vm3085_vm6, %v382_v26, %v453_v18  ;;  %v457_v36 = vsel %vm3029_vm3, %v383_v27, %v456_v22  ;;  %v374_v37 = vor.u32 %v372_v23, %v371_v28  ;;  %v375_v38 = vrot.slane %v371_v28, 4  ;;  %339 = vst [vmem:[#allocation2 + $0x2c] sm:$0x1] %v338_v32  ;;  %v228_v53 = vld [vmem:[%s3059_s23 + $0x10] sm:$0xf] }
  0x28   : > { %652 = vrot.lane.b32.xlu0 %v602_v31, %s2976_s25  ;;  %455 = vst [vmem:[#allocation2 + $0x20] sm:$0xf] %v454_v35  ;;  %458 = vst [vmem:[#allocation2 + $0x24] sm:$0x1] %v457_v36  ;;  %v439_v40 = vsel %vm3029_vm3, %v359_v24, %v438_v39  ;;  %v309_v41 = vsel %vm3029_vm3, 0, %v308_v33  ;;  %v341_v44 = vsel %vm3037_vm5, 0, %v340_v34 }
  0x29   : > { %v448_v42 = vsel %vm3085_vm6, %v374_v37, %v447_v29  ;;  %v451_v43 = vsel %vm3029_vm3, %v375_v38, %v450_v30  ;;  %440 = vst [vmem:[#allocation2 + $0xc] sm:$0x1] %v439_v40  ;;  %310 = vst [vmem:[#allocation2 + $0x30] sm:$0x1] %v309_v41  ;;  %v236_v54 = vld [vmem:[%s3059_s23 + $0x30] sm:$0xf] }
  0x2a   : > { %v508_v45 = vld [vmem:[#allocation2 + $0x10] sm:$0xf]  ;;  %449 = vst [vmem:[#allocation2 + $0x18] sm:$0xf] %v448_v42  ;;  %452 = vst [vmem:[#allocation2 + $0x1c] sm:$0x1] %v451_v43  ;;  %v260_v20 = vmax.bf16 %v236_v54, %v228_v53 }
  0x2b   : > { %342 = vst [vmem:[#allocation2 + $0x34] sm:$0x1] %v341_v44  ;;  %v2603_v46 = vcombine.low %v508_v45, %v508_v45  ;;  %v493_v48 = vld [vmem:[#allocation2 + $0x14] sm:$0x1]  ;;  %v501_v49 = vld [vmem:[#allocation2 + $0x10] sm:$0xe] }
  0x2c   : > { %v507_v47 = vld [vmem:[#allocation2 + $0x8] sm:$0xf]  ;;  %v244_v55 = vld [vmem:[%s3059_s23 + $0x50] sm:$0xf]  ;;  %v2596_v62 = vcombine.low %v501_v49, %v493_v48  ;;  %v229_v63 = vld [vmem:[%s3059_s23 + $0x14] sm:$0xf] }
  0x2d   : > { %742 = vrot.lane.b32.xlu1 %v2603_v46, %s2977_s26  ;;  %v2602_v50 = vcombine.low %v507_v47, %v507_v47  ;;  %v500_v51 = vld [vmem:[#allocation2 + $0x8] sm:$0xe]  ;;  %v3125_v58 = vld [vmem:[#allocation2 + $0x10] sm:$0xf]  ;;  %v237_v2 = vld [vmem:[%s3059_s23 + $0x34] sm:$0xf] }
  0x2e   : > { %v3118_v52 = vld [vmem:[#allocation2 + $0x8] sm:$0xf]  ;;  %v252_v59 = vld [vmem:[%s3059_s23 + $0x70] sm:$0xf]  ;;  %v245_v4 = vld [vmem:[%s3059_s23 + $0x54] sm:$0xf]  ;;  %v2588_v12 = vcombine.low %v3125_v58, %v493_v48  ;;  %v261_v28 = vmax.bf16 %v237_v2, %v229_v63 }
  0x2f   : > { %v3123_v57 = vld [vmem:[#allocation2 + $0x20] sm:$0xf]  ;;  %740 = vrot.lane.b32.xlu0 %v2602_v50, %s2977_s26  ;;  %v253_v5 = vld [vmem:[%s3059_s23 + $0x74] sm:$0xf]  ;;  %v523_v10 = vld [vmem:[#allocation2 + $0x8] sm:$0xe]  ;;  %v268_v21 = vmax.bf16 %v252_v59, %v244_v55 }
  0x30   : > { %v2605_v60 = vcombine.low %v3123_v57, %v3123_v57  ;;  %v492_v61 = vld [vmem:[#allocation2 + $0xc] sm:$0x1]  ;;  %v516_v16 = vld [vmem:[#allocation2 + $0x14] sm:$0x1]  ;;  %v524_v19 = vld [vmem:[#allocation2 + $0x10] sm:$0xe]  ;;  %v269_v29 = vmax.bf16 %v253_v5, %v245_v4 }
  0x31   : > { %v509_v6 = vld [vmem:[#allocation2 + $0x18] sm:$0xf]  ;;  %v2595_v7 = vcombine.low %v500_v51, %v492_v61  ;;  %v2587_v8 = vcombine.low %v3118_v52, %v492_v61  ;;  %v515_v9 = vld [vmem:[#allocation2 + $0xc] sm:$0x1]  ;;  %v494_v14 = vld [vmem:[#allocation2 + $0x1c] sm:$0x1]  ;;  %v2619_v31 = vcombine.low %v524_v19, %v516_v16  ;;  %v3147_v35 = vcombine.low %v508_v45, %v516_v16 }
  0x32   : > { %746 = vrot.lane.b32.xlu1 %v2605_v60, %s2977_s26  ;;  %v2604_v11 = vcombine.low %v509_v6, %v509_v6  ;;  %v3138_v13 = vld [vmem:[#allocation2 + $0x18] sm:$0xf]  ;;  %v3140_v22 = vld [vmem:[#allocation2 + $0x1c] sm:$0x1]  ;;  %v694_v23 = vrot.slane %v2596_v62, 1  ;;  %v2610_v24 = vcombine.low %v507_v47, %v515_v9  ;;  %v2618_v25 = vcombine.low %v523_v10, %v515_v9 }
  0x33   : > { %v502_v15 = vld [vmem:[#allocation2 + $0x18] sm:$0xe]  ;;  %v693_v17 = vrot.slane %v2595_v7, 1  ;;  %v606_v26 = vshll.u32 %v2587_v8, 16  ;;  %v2589_v27 = vcombine.low %v3138_v13, %v494_v14  ;;  %v613_v32 = vshll.u32 %v2588_v12, 16 }
  0x34   : > { %v2597_v18 = vcombine.low %v502_v15, %v494_v14  ;;  %744 = vrot.lane.b32.xlu0 %v2604_v11, %s2977_s26  ;;  %v230_v33 = vld [vmem:[%s3059_s23 + $0x18] sm:$0xf]  ;;  %v3150_v36 = vcombine.low %v509_v6, %v3140_v22  ;;  %v276_v37 = vmax.bf16 %v268_v21, %v260_v20  ;;  %v3154_v40 = vld [vmem:[#allocation2 + $0x24] sm:$0x1]  ;;  %v876_v41 = vrot.slane %v2618_v25, 1 }
  0x35   : > { %v238_v34 = vld [vmem:[%s3059_s23 + $0x38] sm:$0xf]  ;;  %v604_v42 = vshrl.u32 %v2587_v8, 16  ;;  %v608_v43 = vrot.slane %v606_v26, 1  ;;  %v783_v44 = vshll.u32 %v2610_v24, 16  ;;  %v620_v46 = vshll.u32 %v2589_v27, 16 }
  0x36   : > { %702 = vrot.lane.b32.xlu1 %v693_v17, %s2975_s24  ;;  %v695_v30 = vrot.slane %v2597_v18, 1  ;;  %v246_v38 = vld [vmem:[%s3059_s23 + $0x58] sm:$0xf]  ;;  %v3157_v47 = vmax.bf16 %v269_v29, %v261_v28  ;;  %v262_v48 = vmax.bf16 %v238_v34, %v230_v33  ;;  %v877_v45 = vrot.slane %v2619_v31, 1  ;;  %v459_v8 = vld [vmem:[#allocation2 + $0x28] sm:$0xf] }
  0x37   : > { %v254_v39 = vld [vmem:[%s3059_s23 + $0x78] sm:$0xf]  ;;  %v611_v49 = vshrl.u32 %v2588_v12, 16  ;;  %v615_v50 = vrot.slane %v613_v32, 1  ;;  %v790_v53 = vshll.u32 %v3147_v35, 16  ;;  %v3163_v54 = vcombine.low %v3123_v57, %v3154_v40 }
  0x38   : > { %704 = vrot.lane.b32.xlu0 %v694_v23, %s2975_s24  ;;  %v270_v51 = vmax.bf16 %v254_v39, %v246_v38  ;;  %v781_v55 = vshrl.u32 %v2610_v24, 16  ;;  %v797_v59 = vshll.u32 %v3150_v36, 16  ;;  %v609_v60 = vor.u32 %v608_v43, %v604_v42  ;;  %v3169_v7 = vld [vmem:[#allocation2 + $0x18] sm:$0xe]  ;;  %v462_v14 = vld [vmem:[#allocation2 + $0x2c] sm:$0x1] }
  0x39   : > { %v785_v61 = vrot.slane %v783_v44, 1  ;;  %v385_v62 = vshrl.u32 %v276_v37, 16  ;;  %v388_v63 = vshll.u32 %v276_v37, 16  ;;  %v618_v2 = vshrl.u32 %v2589_v27, 16  ;;  %v311_v20 = vld [vmem:[#allocation2 + $0x38] sm:$0x1] }
  0x3a   : > { %706 = vrot.lane.b32.xlu1 %v695_v30, %s2975_s24  ;;  %v622_v4 = vrot.slane %v620_v46, 1  ;;  %v788_v5 = vshrl.u32 %v3147_v35, 16  ;;  %v616_v6 = vor.u32 %v615_v50, %v611_v49  ;;  %v3171_v9 = vmax.bf16 %v270_v51, %v262_v48  ;;  %v343_v21 = vld [vmem:[#allocation2 + $0x3c] sm:$0x1]  ;;  %v465_v24 = vld [vmem:[#allocation2 + $0x30] sm:$0xf] }
  0x3b   : > { %v387_v57 = vrot.slane %v385_v62, 7  ;;  %v795_v10 = vshrl.u32 %v3150_v36, 16  ;;  %v799_v11 = vrot.slane %v797_v59, 1  ;;  %v792_v12 = vrot.slane %v790_v53, 1  ;;  %v468_v25 = vld [vmem:[#allocation2 + $0x34] sm:$0x1] }
  0x3c   : > { %884 = vrot.lane.b32.xlu0 %v876_v41, %s2978_s27  ;;  %v393_v15 = vshrl.u32 %v3157_v47, 16  ;;  %v786_v16 = vor.u32 %v785_v61, %v781_v55  ;;  %v804_v17 = vshll.u32 %v3163_v54, 16  ;;  %v623_v23 = vor.u32 %v622_v4, %v618_v2  ;;  %v231_v26 = vld [vmem:[%s3059_s23 + $0x1c] sm:$0xf]  ;;  %v314_v28 = vld [vmem:[#allocation2 + $0x40] sm:$0x1] }
  0x3d   : > { %v390_v18 = vor.u32 %v388_v63, %v387_v57  ;;  %v391_v19 = vrot.slane %v387_v57, 4  ;;  %v239_v27 = vld [vmem:[%s3059_s23 + $0x3c] sm:$0xf]  ;;  %v396_v32 = vshll.u32 %v3157_v47, 16  ;;  %v346_v35 = vld [vmem:[#allocation2 + $0x44] sm:$0x1]  ;;  %v800_v37 = vor.u32 %v799_v11, %v795_v10 }
  0x3e   : > { %886 = vrot.lane.b32.xlu1 %v877_v45, %s2978_s27  ;;  %v395_v31 = vrot.slane %v393_v15, 7  ;;  %v247_v33 = vld [vmem:[%s3059_s23 + $0x5c] sm:$0xf]  ;;  %v317_v36 = vld [vmem:[#allocation2 + $0x48] sm:$0x1]  ;;  %v2620_v38 = vcombine.low %v3169_v7, %v3140_v22  ;;  %v312_v41 = vsel %vm3029_vm3, 0, %v311_v20  ;;  %v793_v48 = vor.u32 %v792_v12, %v788_v5 }
  0x3f   : > { %v460_v29 = vsel %vm3085_vm6, %v390_v18, %v459_v8  ;;  %v463_v30 = vsel %vm3029_vm3, %v391_v19, %v462_v14  ;;  %v255_v34 = vld [vmem:[%s3059_s23 + $0x7c] sm:$0xf]  ;;  %v3189_v39 = vld [vmem:[#allocation2 + $0x14] sm:$0x1]  ;;  %v344_v42 = vsel %vm3037_vm5, 0, %v343_v21  ;;  %v401_v22 = vshrl.u32 %v3171_v9, 16 }
  0x40   : > { %654 = vrot.lane.b32.xlu0 %v609_v60, %s2976_s25  ;;  %461 = vst [vmem:[#allocation2 + $0x28] sm:$0xf] %v460_v29  ;;  %464 = vst [vmem:[#allocation2 + $0x2c] sm:$0x1] %v463_v30  ;;  %v349_v43 = vld [vmem:[#allocation2 + $0x4c] sm:$0x1]  ;;  %v398_v44 = vor.u32 %v396_v32, %v395_v31  ;;  %v263_v53 = vmax.bf16 %v239_v27, %v231_v26  ;;  %v271_v62 = vmax.bf16 %v255_v34, %v247_v33 }
  0x41   : > { %v399_v46 = vrot.slane %v395_v31, 4  ;;  %313 = vst [vmem:[#allocation2 + $0x38] sm:$0x1] %v312_v41  ;;  %345 = vst [vmem:[#allocation2 + $0x3c] sm:$0x1] %v344_v42  ;;  %v404_v47 = vshll.u32 %v3171_v9, 16 }
  0x42   : > { %656 = vrot.lane.b32.xlu1 %v616_v6, %s2976_s25  ;;  %v802_v45 = vshrl.u32 %v3163_v54, 16  ;;  %v806_v49 = vrot.slane %v804_v17, 1  ;;  %v532_v50 = vld [vmem:[#allocation2 + $0x10] sm:$0xf]  ;;  %v526_v51 = vld [vmem:[#allocation2 + $0x20] sm:$0xe]  ;;  %v466_v55 = vsel %vm3085_vm6, %v398_v44, %v465_v24  ;;  %v279_v12 = vmax.bf16 %v271_v62, %v263_v53 }
  0x43   : > { %v469_v59 = vsel %vm3029_vm3, %v399_v46, %v468_v25  ;;  %v403_v60 = vrot.slane %v401_v22, 7  ;;  %v315_v61 = vsel %vm3029_vm3, 0, %v314_v28  ;;  %467 = vst [vmem:[#allocation2 + $0x30] sm:$0xf] %v466_v55  ;;  %v347_v54 = vsel %vm3037_vm5, 0, %v346_v35 }
  0x44   : > { %836 = vrot.lane.b32.xlu0 %v786_v16, %s2979_s28  ;;  %470 = vst [vmem:[#allocation2 + $0x34] sm:$0x1] %v469_v59  ;;  %316 = vst [vmem:[#allocation2 + $0x40] sm:$0x1] %v315_v61  ;;  %v318_v63 = vsel %vm3029_vm3, 0, %v317_v36  ;;  %v350_v2 = vsel %vm3037_vm5, 0, %v349_v43  ;;  %v2634_v5 = vcombine.low %v532_v50, %v3189_v39  ;;  %v807_v8 = vor.u32 %v806_v49, %v802_v45 }
  0x45   : > { %v878_v4 = vrot.slane %v2620_v38, 1  ;;  %v406_v6 = vor.u32 %v404_v47, %v403_v60  ;;  %348 = vst [vmem:[#allocation2 + $0x44] sm:$0x1] %v347_v54  ;;  %319 = vst [vmem:[#allocation2 + $0x48] sm:$0x1] %v318_v63  ;;  %v407_v57 = vrot.slane %v403_v60, 4  ;;  %v2621_v9 = vcombine.low %v526_v51, %v3154_v40 }
  0x46   : > { %658 = vrot.lane.b32.xlu1 %v623_v23, %s2976_s25  ;;  %351 = vst [vmem:[#allocation2 + $0x4c] sm:$0x1] %v350_v2  ;;  %v3214_v7 = vld [vmem:[#allocation2 + $0x24] sm:$0x1]  ;;  %v534_v10 = vld [vmem:[#allocation2 + $0x20] sm:$0xf]  ;;  %v2626_v14 = vcombine.low %v532_v50, %v532_v50 }
  0x47   : > { %v3218_v3 = vld [vmem:[#allocation2 + $0x1c] sm:$0x1]  ;;  %v2636_v15 = vcombine.low %v534_v10, %v3214_v7  ;;  %v967_v16 = vshll.u32 %v2634_v5, 16  ;;  %v533_v19 = vld [vmem:[#allocation2 + $0x18] sm:$0xf]  ;;  %v879_v20 = vrot.slane %v2621_v9, 1  ;;  %v2628_v25 = vcombine.low %v534_v10, %v534_v10 }
  0x48   : > { %840 = vrot.lane.b32.xlu0 %v800_v37, %s2979_s28  ;;  %v471_v11 = vld [vmem:[#allocation2 + $0x38] sm:$0xf]  ;;  %v474_v18 = vld [vmem:[#allocation2 + $0x3c] sm:$0x1]  ;;  %v2635_v21 = vcombine.low %v533_v19, %v3218_v3  ;;  %v3228_v23 = vld [vmem:[#allocation2 + $0x2c] sm:$0x1]  ;;  %v2627_v33 = vcombine.low %v533_v19, %v533_v19 }
  0x49   : > { %v472_v17 = vsel %vm3085_vm6, %v406_v6, %v471_v11  ;;  %v475_v40 = vsel %vm3029_vm3, %v407_v57, %v474_v18  ;;  %v409_v24 = vshrl.u32 %v279_v12, 16  ;;  %v965_v26 = vshrl.u32 %v2634_v5, 16  ;;  %v3231_v29 = vld [vmem:[#allocation2 + $0x20] sm:$0xf]  ;;  %v535_v30 = vld [vmem:[#allocation2 + $0x28] sm:$0xf] }
  0x4a   : > { %838 = vrot.lane.b32.xlu1 %v793_v48, %s2979_s28  ;;  %473 = vst [vmem:[#allocation2 + $0x38] sm:$0xf] %v472_v17  ;;  %476 = vst [vmem:[#allocation2 + $0x3c] sm:$0x1] %v475_v40  ;;  %v969_v27 = vrot.slane %v967_v16, 1  ;;  %v981_v28 = vshll.u32 %v2636_v15, 16  ;;  %v2637_v34 = vcombine.low %v535_v30, %v3228_v23  ;;  %v2629_v48 = vcombine.low %v535_v30, %v535_v30 }
  0x4b   : > { %v3233_v31 = vld [vmem:[#allocation2 + $0x24] sm:$0x1]  ;;  %v412_v32 = vshll.u32 %v279_v12, 16  ;;  %v974_v35 = vshll.u32 %v2635_v21, 16  ;;  %v411_v36 = vrot.slane %v409_v24, 7  ;;  %v979_v38 = vshrl.u32 %v2636_v15, 16 }
  0x4c   : > { %888 = vrot.lane.b32.xlu0 %v878_v4, %s2978_s27  ;;  %v970_v37 = vor.u32 %v969_v27, %v965_v26  ;;  %v983_v41 = vrot.slane %v981_v28, 1  ;;  %v548_v42 = vld [vmem:[#allocation2 + $0x10] sm:$0xe]  ;;  %v2590_v43 = vcombine.low %v3231_v29, %v3233_v31  ;;  %v477_v44 = vld [vmem:[#allocation2 + $0x40] sm:$0xf]  ;;  %v972_v46 = vshrl.u32 %v2635_v21, 16 }
  0x4d   : > { %v414_v22 = vor.u32 %v412_v32, %v411_v36  ;;  %v480_v47 = vld [vmem:[#allocation2 + $0x44] sm:$0x1]  ;;  %v976_v45 = vrot.slane %v974_v35, 1  ;;  %v988_v49 = vshll.u32 %v2637_v34, 16  ;;  %v415_v50 = vrot.slane %v411_v36, 4  ;;  %v2894_v28 = vld [vmem:[%s3836_s1 + $0x8] sm:$0xff]  }
  0x4e   : > { %842 = vrot.lane.b32.xlu1 %v807_v8, %s2979_s28  ;;  %v2642_v51 = vcombine.low %v548_v42, %v3189_v39  ;;  %v3242_v53 = vld [vmem:[#allocation2 + $0x28] sm:$0xf]  ;;  %v3244_v55 = vld [vmem:[#allocation2 + $0x2c] sm:$0x1]  ;;  %v984_v60 = vor.u32 %v983_v41, %v979_v38  ;;  %v627_v61 = vshll.u32 %v2590_v43, 16  ;;  %v986_v2 = vshrl.u32 %v2637_v34, 16 }
  0x4f   : > { %v478_v59 = vsel %vm3085_vm6, %v414_v22, %v477_v44  ;;  %v481_v62 = vsel %vm3029_vm3, %v415_v50, %v480_v47  ;;  %v3251_v54 = vld [vmem:[#allocation2 + $0x30] sm:$0xf]  ;;  %v3253_v63 = vld [vmem:[#allocation2 + $0x34] sm:$0x1]  ;;  %v977_v39 = vor.u32 %v976_v45, %v972_v46  ;;  %v990_v56 = vrot.slane %v988_v49, 1  ;;  %v2895_v38 = vld [vmem:[%s3836_s1] sm:$0xff]  }
  0x50   : > { %924 = vrot.lane.b32.xlu0 %v2626_v14, %s2980_s29  ;;  %479 = vst [vmem:[#allocation2 + $0x40] sm:$0xf] %v478_v59  ;;  %482 = vst [vmem:[#allocation2 + $0x44] sm:$0x1] %v481_v62  ;;  %v2591_v4 = vcombine.low %v3242_v53, %v3244_v55  ;;  %v1060_v5 = vrot.slane %v2642_v51, 1  ;;  %v625_v57 = vshrl.u32 %v2590_v43, 16  ;;  %v2592_v8 = vcombine.low %v3251_v54, %v3253_v63 }
  0x51   : > { %v549_v6 = vld [vmem:[#allocation2 + $0x18] sm:$0xe]  ;;  %v629_v1 = vrot.slane %v627_v61, 1  ;;  %v550_v9 = vld [vmem:[#allocation2 + $0x20] sm:$0xe]  ;;  %v991_v10 = vor.u32 %v990_v56, %v986_v2  ;;  %vm1177_vm13 = vcmask 195584  }
  0x52   : > { %890 = vrot.lane.b32.xlu1 %v879_v20, %s2978_s27  ;;  %v2643_v11 = vcombine.low %v549_v6, %v3218_v3  ;;  %v634_v12 = vshll.u32 %v2591_v4, 16  ;;  %v3263_v14 = vld [vmem:[#allocation2 + $0x38] sm:$0xf]  ;;  %v3265_v15 = vld [vmem:[#allocation2 + $0x3c] sm:$0x1]  ;;  %v2644_v17 = vcombine.low %v550_v9, %v3214_v7  ;;  %v641_v18 = vshll.u32 %v2592_v8, 16 }
  0x53   : > { %v630_v16 = vor.u32 %v629_v1, %v625_v57  ;;  %v632_v40 = vshrl.u32 %v2591_v4, 16  ;;  %v2593_v3 = vcombine.low %v3263_v14, %v3265_v15  ;;  %v551_v21 = vld [vmem:[#allocation2 + $0x28] sm:$0xe]  ;;  %v2893_v24 = vld [vmem:[%s3836_s1 + $0x10] ss:$0 sps:$4 sm:$0x33]  }
  0x54   : > { %928 = vrot.lane.b32.xlu0 %v2628_v25, %s2980_s29  ;;  %v1061_v19 = vrot.slane %v2643_v11, 1  ;;  %v636_v20 = vrot.slane %v634_v12, 1  ;;  %v1062_v25 = vrot.slane %v2644_v17, 1  ;;  %v639_v26 = vshrl.u32 %v2592_v8, 16  ;;  %v503_v7 = vld [vmem:[#allocation2 + $0x20] sm:$0xe]  ;;  %2807 = vmatprep.subr.msk.bf16.mxu0 %vm1288_vm7, %v2893_v24 }
  0x55   : > { %v643_v27 = vrot.slane %v641_v18, 1  ;;  %v2645_v32 = vcombine.low %v551_v21, %v3228_v23  ;;  %v1290_v34 = vsel %vm1288_vm7, %v2893_v24, 0  ;;  %v2598_v36 = vcombine.low %v503_v7, %v3233_v31  ;;  %v504_v43 = vld [vmem:[#allocation2 + $0x28] sm:$0xe]  ;;  %v519_v31 = vld [vmem:[#allocation2 + $0x2c] sm:$0x1] }
  0x56   : > { %926 = vrot.lane.b32.xlu1 %v2627_v33, %s2980_s29  ;;  %v637_v30 = vor.u32 %v636_v20, %v632_v40  ;;  %v648_v33 = vshll.u32 %v2593_v3, 16  ;;  %2776 = vmatpush3.bf16.msra.mxu0 %v1290_v34  ;;  %v646_v23 = vshrl.u32 %v2593_v3, 16  ;;  %v2599_v47 = vcombine.low %v504_v43, %v3244_v55  ;;  %v506_v45 = vld [vmem:[#allocation2 + $0x38] sm:$0xe]  ;;  %v521_v51 = vld [vmem:[#allocation2 + $0x3c] sm:$0x1] }
  0x57   : > { %v644_v35 = vor.u32 %v643_v27, %v639_v26  ;;  %2777 = vmatprep.subr.bf16.mxu0 %v2894_v28  ;;  %v1063_v41 = vrot.slane %v2645_v32, 1  ;;  %v696_v44 = vrot.slane %v2598_v36, 1  ;;  %v513_v61 = vld [vmem:[#allocation2 + $0x38] sm:$0xf]  ;;  %v520_v62 = vld [vmem:[#allocation2 + $0x34] sm:$0x1] }
  0x58   : > { %1020 = vrot.lane.b32.xlu0 %v970_v37, %s2981_s30  ;;  %v505_v37 = vld [vmem:[#allocation2 + $0x30] sm:$0xe]  ;;  %v650_v42 = vrot.slane %v648_v33, 1  ;;  %v697_v59 = vrot.slane %v2599_v47, 1  ;;  %v2608_v6 = vcombine.low %v513_v61, %v513_v61  ;;  %v514_v9 = vld [vmem:[#allocation2 + $0x40] sm:$0xf] }
  0x59   : > { %v2600_v46 = vcombine.low %v505_v37, %v3253_v63  ;;  %v512_v2 = vld [vmem:[#allocation2 + $0x30] sm:$0xf]  ;;  %v527_v18 = vld [vmem:[#allocation2 + $0x28] sm:$0xe]  ;;  %v544_v33 = vld [vmem:[#allocation2 + $0x34] sm:$0x1] }
  0x5a   : > { %930 = vrot.lane.b32.xlu1 %v2629_v48, %s2980_s29  ;;  %2778 = vmatpush3.bf16.msra.mxu0 %v2894_v28  ;;  %v651_v22 = vor.u32 %v650_v42, %v646_v23  ;;  %v511_v48 = vld [vmem:[#allocation2 + $0x28] sm:$0xf]  ;;  %v2615_v4 = vcombine.low %v512_v2, %v520_v62  ;;  %v2622_v24 = vcombine.low %v527_v18, %v519_v31  ;;  %v528_v28 = vld [vmem:[#allocation2 + $0x30] sm:$0xe]  ;;  %v530_v37 = vld [vmem:[#allocation2 + $0x40] sm:$0xe] }
  0x5b   : > { %2779 = vmatprep.subr.bf16.mxu0 %v2895_v38  ;;  %v698_v49 = vrot.slane %v2600_v46, 1  ;;  %v2614_v50 = vcombine.low %v511_v48, %v519_v31  ;;  %v2606_v63 = vcombine.low %v511_v48, %v511_v48  ;;  %v536_v36 = vld [vmem:[#allocation2 + $0x30] sm:$0xf]  ;;  %v546_v23 = vld [vmem:[#allocation2 + $0x44] sm:$0x1]  ;;  %vm1194_vm14 = vcmask 228352  }
  0x5c   : > { %1024 = vrot.lane.b32.xlu0 %v984_v60, %s2981_s30  ;;  %v2601_v60 = vcombine.low %v506_v45, %v3265_v15  ;;  %v818_v12 = vshll.u32 %v2615_v4, 16  ;;  %v816_v40 = vshrl.u32 %v2615_v4, 16  ;;  %v545_v46 = vld [vmem:[#allocation2 + $0x3c] sm:$0x1]  ;;  %v2630_v31 = vcombine.low %v536_v36, %v536_v36  ;;  %v537_v48 = vld [vmem:[#allocation2 + $0x38] sm:$0xf] }
  0x5d   : > { %v811_v55 = vshll.u32 %v2614_v50, 16  ;;  %v809_v57 = vshrl.u32 %v2614_v50, 16  ;;  %v547_v50 = vld [vmem:[#allocation2 + $0x4c] sm:$0x1]  ;;  %v553_v18 = vld [vmem:[#allocation2 + $0x38] sm:$0xe] }
  0x5e   : > { %1022 = vrot.lane.b32.xlu1 %v977_v39, %s2981_s30  ;;  %2780 = vmatpush3.bf16.msra.mxu0 %v2895_v38  ;;  %v2616_v39 = vcombine.low %v513_v61, %v521_v51  ;;  %v699_v56 = vrot.slane %v2601_v60, 1  ;;  %v820_v20 = vrot.slane %v818_v12, 1  ;;  %v554_v12 = vld [vmem:[#allocation2 + $0x40] sm:$0xe]  ;;  %vm1211_vm15 = vcmask 261120  }
  0x5f   : > { %v813_v1 = vrot.slane %v811_v55, 1  ;;  %vm1275_vm0 = vcmask 293888   ;;  %vm1365_vm1 = vcmask 60416   ;;  %vm1367_vm3 = vcmask 57344  }
  0x60   : > { %1068 = vrot.lane.b32.xlu0 %v1060_v5, %s2982_s6  ;;  %v522_v5 = vld [vmem:[#allocation2 + $0x44] sm:$0x1]  ;;  %v825_v8 = vshll.u32 %v2616_v39, 16  ;;  %v821_v26 = vor.u32 %v820_v20, %v816_v40  ;;  %v2648_v20 = vcombine.low %v554_v12, %v546_v23  ;;  %1366 = vst.msk [vmem:[#allocation3] sm:$0xf] %vm1365_vm1, %v2974_v0  ;;  %vm3409_vm5 = vmand %vm1367_vm3, %vm288_vm2  ;;  %vm2271_vm7 = vcmask 326656  }
  0x61   : > { %v2617_v11 = vcombine.low %v514_v9, %v522_v5  ;;  %v814_v15 = vor.u32 %v813_v1, %v809_v57  ;;  %v2625_v43 = vcombine.low %v530_v37, %v522_v5  ;;  %v552_v5 = vld [vmem:[#allocation2 + $0x30] sm:$0xe]  ;;  %1370 = vst.msk [vmem:[#allocation3 + $0x48] sm:$0xf] %vm1365_vm1, %v2974_v0  ;;  %vm3417_vm6 = vmand %vm1367_vm3, %vm320_vm4 }
  0x62   : > { %1026 = vrot.lane.b32.xlu1 %v991_v10, %s2981_s30  ;;  %v2607_v10 = vcombine.low %v512_v2, %v512_v2  ;;  %v827_v17 = vrot.slane %v825_v8, 1  ;;  %1368 = vst.msk [vmem:[#allocation3 + $0x4] sm:$0x1] %vm1367_vm3, %v2974_v0  ;;  %1371 = vst.msk [vmem:[#allocation3 + $0x4c] sm:$0x1] %vm1367_vm3, %v2974_v0 }
  0x63   : > { %v832_v3 = vshll.u32 %v2617_v11, 16  ;;  %v830_v27 = vshrl.u32 %v2617_v11, 16  ;;  %v883_v45 = vrot.slane %v2625_v43, 1  ;;  %v2646_v11 = vcombine.low %v552_v5, %v544_v33  ;;  %vm3480_vm2 = vmand %vm1365_vm1, %vm320_vm4 }
  0x64   : > { %660 = vrot.lane.b32.xlu0 %v630_v16, %s2976_s25  ;;  %v823_v16 = vshrl.u32 %v2616_v39, 16  ;;  %vm2415_vm4 = vcmask 1043456  }
  0x65   : > { %v834_v7 = vrot.slane %v832_v3, 1  ;;  %v1064_v40 = vrot.slane %v2646_v11, 1 }
  0x66   : > { %1070 = vrot.lane.b32.xlu1 %v1061_v19, %s2982_s6  ;;  %v2609_v19 = vcombine.low %v514_v9, %v514_v9  ;;  %v828_v21 = vor.u32 %v827_v17, %v823_v16 }
  0x67   : > { %v835_v34 = vor.u32 %v834_v7, %v830_v27  ;;  %v1374_v0 = vld [vmem:[#allocation3] sm:$0x1] }
  0x68   : > { %1072 = vrot.lane.b32.xlu0 %v1062_v25, %s2982_s6  ;;  %v529_v25 = vld [vmem:[#allocation2 + $0x38] sm:$0xe] }
  0x69   : > { %v2624_v32 = vcombine.low %v529_v25, %v521_v51  ;;  %v555_v25 = vld [vmem:[#allocation2 + $0x48] sm:$0xe] }
  0x6a   : > { %662 = vrot.lane.b32.xlu1 %v637_v30, %s2976_s25  ;;  %v880_v30 = vrot.slane %v2622_v24, 1 }
  0x6b   : > { %v882_v38 = vrot.slane %v2624_v32, 1 }
  0x6c   : > { %664 = vrot.lane.b32.xlu0 %v644_v35, %s2976_s25  ;;  %v2623_v35 = vcombine.low %v528_v28, %v520_v62  ;;  %v539_v62 = vld [vmem:[#allocation2 + $0x48] sm:$0xf]  ;;  %v2649_v28 = vcombine.low %v555_v25, %v547_v50 }
  0x6d   : > { %v2641_v39 = vcombine.low %v539_v62, %v547_v50  ;;  %v2633_v57 = vcombine.low %v539_v62, %v539_v62 }
  0x6e   : > { %1074 = vrot.lane.b32.xlu1 %v1063_v41, %s2982_s6  ;;  %v2638_v41 = vcombine.low %v536_v36, %v544_v33  ;;  %v881_v42 = vrot.slane %v2623_v35, 1  ;;  %v1067_v33 = vrot.slane %v2649_v28, 1 }
  0x6f   : > { %v1016_v9 = vshll.u32 %v2641_v39, 16  ;;  %v1014_v16 = vshrl.u32 %v2641_v39, 16 }
  0x70   : > { %708 = vrot.lane.b32.xlu0 %v696_v44, %s2975_s24  ;;  %v538_v44 = vld [vmem:[#allocation2 + $0x40] sm:$0xf]  ;;  %v995_v47 = vshll.u32 %v2638_v41, 16 }
  0x71   : > { %v2632_v51 = vcombine.low %v538_v44, %v538_v44  ;;  %v1018_v17 = vrot.slane %v1016_v9, 1 }
  0x72   : > { %666 = vrot.lane.b32.xlu1 %v651_v22, %s2976_s25  ;;  %v2640_v22 = vcombine.low %v538_v44, %v546_v23  ;;  %v997_v60 = vrot.slane %v995_v47, 1 }
  0x73   : > { %v1019_v3 = vor.u32 %v1018_v17, %v1014_v16 }
  0x74   : > { %712 = vrot.lane.b32.xlu0 %v698_v49, %s2975_s24  ;;  %v2639_v49 = vcombine.low %v537_v48, %v545_v46  ;;  %v1009_v61 = vshll.u32 %v2640_v22, 16 }
  0x76   : > { %710 = vrot.lane.b32.xlu1 %v697_v59, %s2975_s24  ;;  %v993_v59 = vshrl.u32 %v2638_v41, 16  ;;  %v1002_v55 = vshll.u32 %v2639_v49, 16  ;;  %v1011_v4 = vrot.slane %v1009_v61, 1  ;;  %v1000_v1 = vshrl.u32 %v2639_v49, 16 }
  0x78   : > { %748 = vrot.lane.b32.xlu0 %v2606_v63, %s2977_s26  ;;  %v2631_v63 = vcombine.low %v537_v48, %v537_v48  ;;  %v998_v2 = vor.u32 %v997_v60, %v993_v59  ;;  %v1004_v8 = vrot.slane %v1002_v55, 1 }
  0x7a   : > { %714 = vrot.lane.b32.xlu1 %v699_v56, %s2975_s24  ;;  %v1007_v56 = vshrl.u32 %v2640_v22, 16 }
  0x7c   : > { %752 = vrot.lane.b32.xlu0 %v2608_v6, %s2977_s26 }
  0x7e   : > { %750 = vrot.lane.b32.xlu1 %v2607_v10, %s2977_s26  ;;  %v1012_v10 = vor.u32 %v1011_v4, %v1007_v56 }
  0x80   : > { %844 = vrot.lane.b32.xlu0 %v814_v15, %s2979_s28  ;;  %v1005_v15 = vor.u32 %v1004_v8, %v1000_v1 }
  0x82   : > { %754 = vrot.lane.b32.xlu1 %v2609_v19, %s2977_s26 }
  0x84   : > { %848 = vrot.lane.b32.xlu0 %v828_v21, %s2979_s28  ;;  %v2647_v21 = vcombine.low %v553_v18, %v545_v46 }
  0x86   : > { %846 = vrot.lane.b32.xlu1 %v821_v26, %s2979_s28  ;;  %v1066_v26 = vrot.slane %v2648_v20, 1  ;;  %v1065_v7 = vrot.slane %v2647_v21, 1 }
  0x88   : > { %892 = vrot.lane.b32.xlu0 %v880_v30, %s2978_s27 }
  0x8a   : > { %850 = vrot.lane.b32.xlu1 %v835_v34, %s2979_s28 }
  0x8c   : > { %896 = vrot.lane.b32.xlu0 %v882_v38, %s2978_s27 }
  0x8e   : > { %894 = vrot.lane.b32.xlu1 %v881_v42, %s2978_s27 }
  0x90   : > { %932 = vrot.lane.b32.xlu0 %v2630_v31, %s2980_s29 }
  0x92   : > { %898 = vrot.lane.b32.xlu1 %v883_v45, %s2978_s27 }
  0x94   : > { %936 = vrot.lane.b32.xlu0 %v2632_v51, %s2980_s29  ;;  %v2965_v51 = vld [vmem:[#allocation2] sm:$0xf] }
  0x96   : > { %934 = vrot.lane.b32.xlu1 %v2631_v63, %s2980_s29  ;;  %v701_v6 = vpop.permute.xlu0 %700 }
  0x98   : > { %1028 = vrot.lane.b32.xlu0 %v998_v2, %s2981_s30 }
  0x9a   : > { %938 = vrot.lane.b32.xlu1 %v2633_v57, %s2980_s29  ;;  %v653_v19 = vpop.permute.xlu0 %652 }
  0x9b   : > { %v1087_v59 = vsel %vm1084_vm8, %v2965_v51, %v653_v19 }
  0x9c   : > { %1032 = vrot.lane.b32.xlu0 %v1012_v10, %s2981_s30  ;;  %v1111_v63 = vsel %vm1109_vm9, %v1087_v59, %v701_v6 }
  0x9e   : > { %1030 = vrot.lane.b32.xlu1 %v1005_v15, %s2981_s30 }
  0x9f   : > { %v743_v24 = vpop.permute.xlu1 %742 }
  0xa0   : > { %1076 = vrot.lane.b32.xlu0 %v1064_v40, %s2982_s6 }
  0xa1   : > { %v741_v27 = vpop.permute.xlu0 %740 }
  0xa2   : > { %1034 = vrot.lane.b32.xlu1 %v1019_v3, %s2981_s30  ;;  %v1128_v2 = vsel %vm1126_vm10, %v1111_v63, %v741_v27 }
  0xa4   : > { %v3318_v30 = vpop.permute.xlu1 %746  ;;  %1080 = vrot.lane.b32.xlu0 %v1066_v26, %s2982_s6 }
  0xa6   : > { %v745_v32 = vpop.permute.xlu0 %744  ;;  %1078 = vrot.lane.b32.xlu1 %v1065_v7, %s2982_s6 }
  0xa8   : > { %v703_v34 = vpop.permute.xlu1 %702 }
  0xaa   : > { %v705_v35 = vpop.permute.xlu0 %704  ;;  %1082 = vrot.lane.b32.xlu1 %v1067_v33, %s2982_s6 }
  0xac   : > { %v707_v36 = vpop.permute.xlu1 %706 }
  0xae   : > { %v885_v37 = vpop.permute.xlu0 %884 }
  0xb0   : > { %v887_v38 = vpop.permute.xlu1 %886 }
  0xb2   : > { %v655_v41 = vpop.permute.xlu0 %654 }
  0xb3   : > { %v1090_v60 = vsel %vm1084_vm8, %v3118_v52, %v655_v41 }
  0xb4   : > { %v657_v23 = vpop.permute.xlu1 %656  ;;  %v1113_v39 = vsel %vm1109_vm9, %v1090_v60, %v703_v34 }
  0xb5   : > { %v1130_v56 = vsel %vm1126_vm10, %v1113_v39, %v743_v24  ;;  %v1093_v6 = vsel %vm1084_vm8, %v3125_v58, %v657_v23 }
  0xb6   : > { %v837_v42 = vpop.permute.xlu0 %836  ;;  %v1115_v58 = vsel %vm1109_vm9, %v1093_v6, %v705_v35 }
  0xb7   : > { %v1145_v5 = vsel %vm1143_vm11, %v1128_v2, %v837_v42  ;;  %v1132_v3 = vsel %vm1126_vm10, %v1115_v58, %v745_v32 }
  0xb8   : > { %v659_v43 = vpop.permute.xlu1 %658  ;;  %v1162_v8 = vsel %vm1160_vm12, %v1145_v5, %v885_v37 }
  0xb9   : > { %v1096_v1 = vsel %vm1084_vm8, %v3138_v13, %v659_v43 }
  0xba   : > { %v841_v44 = vpop.permute.xlu0 %840  ;;  %v1117_v18 = vsel %vm1109_vm9, %v1096_v1, %v707_v36 }
  0xbb   : > { %v1134_v21 = vsel %vm1126_vm10, %v1117_v18, %v3318_v30  ;;  %v1149_v25 = vsel %vm1143_vm11, %v1132_v3, %v841_v44 }
  0xbc   : > { %v839_v46 = vpop.permute.xlu1 %838 }
  0xbd   : > { %v1147_v57 = vsel %vm1143_vm11, %v1130_v56, %v839_v46 }
  0xbe   : > { %v889_v31 = vpop.permute.xlu0 %888  ;;  %v1164_v9 = vsel %vm1160_vm12, %v1147_v57, %v887_v38 }
  0xbf   : > { %v1166_v27 = vsel %vm1160_vm12, %v1149_v25, %v889_v31 }
  0xc0   : > { %v843_v22 = vpop.permute.xlu1 %842 }
  0xc1   : > { %v1151_v26 = vsel %vm1143_vm11, %v1134_v21, %v843_v22 }
  0xc2   : > { %v925_v47 = vpop.permute.xlu0 %924 }
  0xc3   : > { %v1179_v11 = vsel %vm1177_vm13, %v1162_v8, %v925_v47 }
  0xc4   : > { %v891_v48 = vpop.permute.xlu1 %890 }
  0xc5   : > { %v1168_v7 = vsel %vm1160_vm12, %v1151_v26, %v891_v48 }
  0xc6   : > { %v929_v45 = vpop.permute.xlu0 %928 }
  0xc7   : > { %v1183_v33 = vsel %vm1177_vm13, %v1166_v27, %v929_v45 }
  0xc8   : > { %v927_v49 = vpop.permute.xlu1 %926 }
  0xc9   : > { %v1181_v12 = vsel %vm1177_vm13, %v1164_v9, %v927_v49 }
  0xca   : > { %v1021_v50 = vpop.permute.xlu0 %1020 }
  0xcb   : > { %v1196_v15 = vsel %vm1194_vm14, %v1179_v11, %v1021_v50 }
  0xcc   : > { %v931_v61 = vpop.permute.xlu1 %930 }
  0xcd   : > { %v1185_v34 = vsel %vm1177_vm13, %v1168_v7, %v931_v61 }
  0xce   : > { %v1025_v62 = vpop.permute.xlu0 %1024 }
  0xcf   : > { %v1200_v32 = vsel %vm1194_vm14, %v1183_v33, %v1025_v62 }
  0xd0   : > { %v1023_v55 = vpop.permute.xlu1 %1022 }
  0xd1   : > { %v1198_v16 = vsel %vm1194_vm14, %v1181_v12, %v1023_v55 }
  0xd2   : > { %v1069_v4 = vpop.permute.xlu0 %1068 }
  0xd3   : > { %v1213_v13 = vsel %vm1211_vm15, %v1196_v15, %v1069_v4 }
  0xd4   : > { %v1027_v52 = vpop.permute.xlu1 %1026 }
  0xd5   : > { %v1202_v30 = vsel %vm1194_vm14, %v1185_v34, %v1027_v52 }
  0xd6   : > { %v661_v10 = vpop.permute.xlu0 %660 }
  0xd7   : > { %v1099_v5 = vsel %vm1084_vm8, %v3231_v29, %v661_v10 }
  0xd8   : > { %v1071_v17 = vpop.permute.xlu1 %1070 }
  0xd9   : > { %v1215_v19 = vsel %vm1211_vm15, %v1198_v16, %v1071_v17 }
  0xda   : > { %v1073_v40 = vpop.permute.xlu0 %1072  ;;  %v2651_v20 = vcombine.low %v1213_v13, %v1215_v19 }
  0xdb   : > { %v1217_v36 = vsel %vm1211_vm15, %v1200_v32, %v1073_v40 }
  0xdc   : > { %v663_v24 = vpop.permute.xlu1 %662  ;;  %2781 = vmatprep.mubr.msk.bf16.mxu0 %vm1275_vm0, %v2651_v20 }
  0xdd   : > { %v1102_v57 = vsel %vm1084_vm8, %v3242_v53, %v663_v24 }
  0xde   : > { %v665_v28 = vpop.permute.xlu0 %664 }
  0xdf   : > { %v1105_v52 = vsel %vm1084_vm8, %v3251_v54, %v665_v28 }
  0xe0   : > { %v1075_v35 = vpop.permute.xlu1 %1074 }
  0xe1   : > { %v1219_v37 = vsel %vm1211_vm15, %v1202_v30, %v1075_v35 }
  0xe2   : > { %v2652_v38 = vcombine.low %v1217_v36, %v1219_v37  ;;  %v709_v41 = vpop.permute.xlu0 %708 }
  0xe3   : > { %v1119_v6 = vsel %vm1109_vm9, %v1099_v5, %v709_v41  ;;  %v1380_v5 = vld [vmem:[#allocation3 + $0x10] sm:$0x1] }
  0xe4   : > { %v667_v23 = vpop.permute.xlu1 %666  ;;  %2782 = vmatmul.mubr.msk.bf16.vlgmr.msra.gmra.mxu0 %vm1275_vm0, %v2652_v38 }
  0xe5   : > { %v1108_v53 = vsel %vm1084_vm8, %v3263_v14, %v667_v23  ;;  %v1375_v23 = vsel %vm3409_vm5, 0, %v1374_v0  ;;  %vm2288_vm8 = vcmask 392192  }
  0xe6   : > { %v713_v42 = vpop.permute.xlu0 %712  ;;  %1376 = vst [vmem:[#allocation3] sm:$0x1] %v1375_v23 }
  0xe7   : > { %v1123_v10 = vsel %vm1109_vm9, %v1105_v52, %v713_v42  ;;  %v1381_v52 = vsel %vm3409_vm5, 0, %v1380_v5 }
  0xe8   : > { %v711_v43 = vpop.permute.xlu1 %710  ;;  %1382 = vst [vmem:[#allocation3 + $0x10] sm:$0x1] %v1381_v52 }
  0xe9   : > { %v1121_v1 = vsel %vm1109_vm9, %v1102_v57, %v711_v43  ;;  %v1405_v43 = vld [vmem:[#allocation3 + $0x4] sm:$0x1]  ;;  %v1411_v57 = vld [vmem:[#allocation3 + $0x14] sm:$0x1] }
  0xea   : > { %v749_v44 = vpop.permute.xlu0 %748 }
  0xeb   : > { %v1136_v8 = vsel %vm1126_vm10, %v1119_v6, %v749_v44  ;;  %v1406_v44 = vsel %vm3417_vm6, 0, %v1405_v43  ;;  %v1412_v6 = vsel %vm3417_vm6, 0, %v1411_v57 }
  0xec   : > { %v715_v46 = vpop.permute.xlu1 %714  ;;  %1407 = vst [vmem:[#allocation3 + $0x4] sm:$0x1] %v1406_v44  ;;  %1413 = vst [vmem:[#allocation3 + $0x14] sm:$0x1] %v1412_v6 }
  0xed   : > { %v1125_v17 = vsel %vm1109_vm9, %v1108_v53, %v715_v46  ;;  %v1401_v46 = vld [vmem:[#allocation3 + $0x48] sm:$0x1] }
  0xee   : > { %v753_v31 = vpop.permute.xlu0 %752 }
  0xef   : > { %v1140_v58 = vsel %vm1126_vm10, %v1123_v10, %v753_v31  ;;  %v1383_v31 = vld [vmem:[#allocation3 + $0x18] sm:$0x1] }
  0xf0   : > { %v751_v22 = vpop.permute.xlu1 %750 }
  0xf1   : > { %v1138_v9 = vsel %vm1126_vm10, %v1121_v1, %v751_v22  ;;  %v1402_v22 = vsel %vm3409_vm5, 0, %v1401_v46 }
  0xf2   : > { %v845_v47 = vpop.permute.xlu0 %844  ;;  %1403 = vst [vmem:[#allocation3 + $0x48] sm:$0x1] %v1402_v22 }
  0xf3   : > { %v1153_v15 = vsel %vm1143_vm11, %v1136_v8, %v845_v47  ;;  %v1414_v47 = vld [vmem:[#allocation3 + $0x1c] sm:$0x1] }
  0xf4   : > { %v755_v48 = vpop.permute.xlu1 %754 }
  0xf5   : > { %v1142_v19 = vsel %vm1126_vm10, %v1125_v17, %v755_v48  ;;  %v1384_v48 = vsel %vm3409_vm5, 0, %v1383_v31  ;;  %vm2305_vm10 = vcmask 457728  }
  0xf6   : > { %v849_v45 = vpop.permute.xlu0 %848  ;;  %1385 = vst [vmem:[#allocation3 + $0x18] sm:$0x1] %v1384_v48 }
  0xf7   : > { %v1157_v40 = vsel %vm1143_vm11, %v1140_v58, %v849_v45  ;;  %v1415_v45 = vsel %vm3417_vm6, 0, %v1414_v47 }
  0xf8   : > { %v847_v49 = vpop.permute.xlu1 %846  ;;  %1416 = vst [vmem:[#allocation3 + $0x1c] sm:$0x1] %v1415_v45 }
  0xf9   : > { %v1155_v29 = vsel %vm1143_vm11, %v1138_v9, %v847_v49  ;;  %v1432_v49 = vld [vmem:[#allocation3 + $0x4c] sm:$0x1]  ;;  %v1654_v8 = vld [vmem:[#allocation3 + $0x48] sm:$0xf] }
  0xfa   : > { %v893_v50 = vpop.permute.xlu0 %892 }
  0xfb   : > { %v1170_v54 = vsel %vm1160_vm12, %v1153_v15, %v893_v50  ;;  %v1377_v50 = vld [vmem:[#allocation3 + $0x8] sm:$0x1] }
  0xfc   : > { %v851_v51 = vpop.permute.xlu1 %850 }
  0xfd   : > { %v1159_v21 = vsel %vm1143_vm11, %v1142_v19, %v851_v51  ;;  %v1408_v51 = vld [vmem:[#allocation3 + $0xc] sm:$0x1]  ;;  %v1395_v19 = vld [vmem:[#allocation3 + $0x38] sm:$0x1] }
  0xfe   : > { %v897_v59 = vpop.permute.xlu0 %896 }
  0xff   : > { %v1174_v24 = vsel %vm1160_vm12, %v1157_v40, %v897_v59  ;;  %v1433_v59 = vsel %vm3417_vm6, 0, %v1432_v49  ;;  %v1426_v40 = vld [vmem:[#allocation3 + $0x3c] sm:$0x1] }
 0x100   : > { %v895_v60 = vpop.permute.xlu1 %894  ;;  %1434 = vst [vmem:[#allocation3 + $0x4c] sm:$0x1] %v1433_v59 }
 0x101   : > { %v1172_v16 = vsel %vm1160_vm12, %v1155_v29, %v895_v60  ;;  %v1378_v60 = vsel %vm3409_vm5, 0, %v1377_v50  ;;  %v2717_v29 = vcombine.low %v1654_v8, %v1654_v8 }
 0x102   : > { %v933_v61 = vpop.permute.xlu0 %932  ;;  %1379 = vst [vmem:[#allocation3 + $0x8] sm:$0x1] %v1378_v60 }
 0x103   : > { %v1187_v18 = vsel %vm1177_vm13, %v1170_v54, %v933_v61  ;;  %v1409_v61 = vsel %vm3417_vm6, 0, %v1408_v51  ;;  %v1614_v54 = vld [vmem:[#allocation3] sm:$0xe]  ;;  %2053 = vrot.lane.b32.xlu1 %v2717_v29, %s2983_s13 }
 0x104   : > { %v899_v62 = vpop.permute.xlu1 %898  ;;  %1410 = vst [vmem:[#allocation3 + $0xc] sm:$0x1] %v1409_v61  ;;  %v1562_v61 = vld [vmem:[#allocation3 + $0x18] sm:$0xf] }
 0x105   : > { %v1176_v27 = vsel %vm1160_vm12, %v1159_v21, %v899_v62  ;;  %v1386_v62 = vld [vmem:[#allocation3 + $0x20] sm:$0x1]  ;;  %v1420_v21 = vld [vmem:[#allocation3 + $0x2c] sm:$0x1]  ;;  %vm2322_vm12 = vcmask 523264  }
 0x106   : > { %v937_v63 = vpop.permute.xlu0 %936 }
 0x107   : > { %v1191_v33 = vsel %vm1177_vm13, %v1174_v24, %v937_v63  ;;  %v1417_v63 = vld [vmem:[#allocation3 + $0x24] sm:$0x1]  ;;  %v3446_v9 = vld [vmem:[#allocation3 + $0x4c] sm:$0x1] }
 0x108   : > { %v935_v39 = vpop.permute.xlu1 %934  ;;  %v2725_v15 = vcombine.low %v1654_v8, %v3446_v9 }
 0x109   : > { %v1189_v13 = vsel %vm1177_vm13, %v1172_v16, %v935_v39  ;;  %v1387_v39 = vsel %vm3409_vm5, 0, %v1386_v62  ;;  %v1565_v62 = vld [vmem:[#allocation3 + $0x1c] sm:$0x1]  ;;  %v1550_v57 = vld [vmem:[#allocation3 + $0x8] sm:$0xf] }
 0x10a   : > { %v1029_v55 = vpop.permute.xlu0 %1028  ;;  %1388 = vst [vmem:[#allocation3 + $0x20] sm:$0x1] %v1387_v39  ;;  %v2131_v10 = vshll.u32 %v2725_v15, 16  ;;  %v2129_v16 = vshrl.u32 %v2725_v15, 16 }
 0x10b   : > { %v1204_v14 = vsel %vm1194_vm14, %v1187_v18, %v1029_v55  ;;  %v1418_v55 = vsel %vm3417_vm6, 0, %v1417_v63  ;;  %v1553_v52 = vld [vmem:[#allocation3 + $0xc] sm:$0x1] }
 0x10c   : > { %v939_v2 = vpop.permute.xlu1 %938  ;;  %1419 = vst [vmem:[#allocation3 + $0x24] sm:$0x1] %v1418_v55  ;;  %v2133_v58 = vrot.slane %v2131_v10, 1 }
 0x10d   : > { %v1193_v34 = vsel %vm1177_vm13, %v1176_v27, %v939_v2  ;;  %v3439_v2 = vld [vmem:[#allocation3] sm:$0xf]  ;;  %v1429_v27 = vld [vmem:[#allocation3 + $0x44] sm:$0x1] }
 0x10e   : > { %v1033_v56 = vpop.permute.xlu0 %1032 }
 0x10f   : > { %v1208_v32 = vsel %vm1194_vm14, %v1191_v33, %v1033_v56  ;;  %v1606_v56 = vld [vmem:[#allocation3 + $0x4] sm:$0x1]  ;;  %v1392_v33 = vld [vmem:[#allocation3 + $0x30] sm:$0x1] }
 0x110   : > { %v1031_v4 = vpop.permute.xlu1 %1030  ;;  %v2678_v17 = vcombine.low %v1614_v54, %v1606_v56 }
 0x111   : > { %v1206_v20 = vsel %vm1194_vm14, %v1189_v13, %v1031_v4  ;;  %v2670_v4 = vcombine.low %v3439_v2, %v1606_v56  ;;  %v2134_v13 = vor.u32 %v2133_v58, %v2129_v16  ;;  %v1568_v16 = vld [vmem:[#allocation3 + $0x20] sm:$0xf] }
 0x112   : > { %v1077_v11 = vpop.permute.xlu0 %1076  ;;  %v1807_v18 = vrot.slane %v2678_v17, 1 }
 0x113   : > { %v1221_v25 = vsel %vm1211_vm15, %v1204_v14, %v1077_v11  ;;  %v1714_v1 = vshll.u32 %v2670_v4, 16  ;;  %v1712_v11 = vshrl.u32 %v2670_v4, 16  ;;  %2149 = vrot.lane.b32.xlu1 %v2134_v13, %s2984_s14  ;;  %v1396_v14 = vsel %vm3409_vm5, 0, %v1395_v19  ;;  %v1571_v17 = vld [vmem:[#allocation3 + $0x24] sm:$0x1] }
 0x114   : > { %v1035_v12 = vpop.permute.xlu1 %1034  ;;  %1397 = vst [vmem:[#allocation3 + $0x38] sm:$0x1] %v1396_v14  ;;  %v1559_v14 = vld [vmem:[#allocation3 + $0x14] sm:$0x1] }
 0x115   : > { %v1210_v30 = vsel %vm1194_vm14, %v1193_v34, %v1035_v12  ;;  %v1716_v12 = vrot.slane %v1714_v1, 1  ;;  %v1423_v34 = vld [vmem:[#allocation3 + $0x34] sm:$0x1]  ;;  %vm2402_vm14 = vcmask 588800  }
 0x116   : > { %v1081_v7 = vpop.permute.xlu0 %1080 }
 0x117   : > { %v1225_v36 = vsel %vm1211_vm15, %v1208_v32, %v1081_v7  ;;  %v1717_v53 = vor.u32 %v1716_v12, %v1712_v11  ;;  %v1393_v32 = vsel %vm3409_vm5, 0, %v1392_v33 }
 0x118   : > { %v1079_v3 = vpop.permute.xlu1 %1078  ;;  %1394 = vst [vmem:[#allocation3 + $0x30] sm:$0x1] %v1393_v32 }
 0x119   : > { %v1223_v26 = vsel %vm1211_vm15, %v1206_v20, %v1079_v3  ;;  %1767 = vrot.lane.b32.xlu0 %v1717_v53, %s2975_s24  ;;  %v1427_v20 = vsel %vm3417_vm6, 0, %v1426_v40  ;;  %v1389_v3 = vld [vmem:[#allocation3 + $0x28] sm:$0x1]  ;;  %v1556_v40 = vld [vmem:[#allocation3 + $0x10] sm:$0xf] }
 0x11a   : > { %v2653_v28 = vcombine.low %v1221_v25, %v1223_v26  ;;  %1428 = vst [vmem:[#allocation3 + $0x3c] sm:$0x1] %v1427_v20  ;;  %v1390_v24 = vsel %vm3409_vm5, 0, %v1389_v3  ;;  %v1421_v25 = vsel %vm3417_vm6, 0, %v1420_v21  ;;  %v1398_v26 = vld [vmem:[#allocation3 + $0x40] sm:$0x1] }
 0x11b   : > { %1391 = vst [vmem:[#allocation3 + $0x28] sm:$0x1] %v1390_v24  ;;  %1422 = vst [vmem:[#allocation3 + $0x2c] sm:$0x1] %v1421_v25  ;;  %v1399_v7 = vsel %vm3409_vm5, 0, %v1398_v26 }
 0x11c   : > { %v1083_v35 = vpop.permute.xlu1 %1082  ;;  %2785 = vmatprep.mubr.msk.bf16.mxu0 %vm1275_vm0, %v2653_v28  ;;  %v1430_v28 = vsel %vm3417_vm6, 0, %v1429_v27  ;;  %1400 = vst [vmem:[#allocation3 + $0x40] sm:$0x1] %v1399_v7 }
 0x11d   : > { %v1227_v37 = vsel %vm1211_vm15, %v1210_v30, %v1083_v35  ;;  %1815 = vrot.lane.b32.xlu0 %v1807_v18, %s2979_s28  ;;  %1431 = vst [vmem:[#allocation3 + $0x44] sm:$0x1] %v1430_v28  ;;  %v1424_v30 = vsel %vm3417_vm6, 0, %v1423_v34  ;;  %v3472_v35 = vld [vmem:[%s3837_s2] ss:$0 sm:$0xff] }
 0x11e   : > { %v2654_v38 = vcombine.low %v1225_v36, %v1227_v37  ;;  %1425 = vst [vmem:[#allocation3 + $0x34] sm:$0x1] %v1424_v30 }
 0x120   : > { %2786 = vmatmul.mubr.msk.bf16.gmra.mxu0 %vm1275_vm0, %v2654_v38 }
 0x1a4   : > { %v2783_v36 = vpop.f32.mrf.mxu0 }
 0x1a5   : > { %v1335_v37 = vadd.f32 %v2783_v36, %v3472_v35 }
 0x1a6   : > { %v1326_v38 = vpop.f32.mrf.mxu0 }
 0x1a7   : > { %v1359_v0 = vmax.f32 %v1335_v37, 0.0  ;;  %v1327_v23 = vadd.f32 %v3472_v35, %v1326_v38 }
 0x1a8   : > { %v2784_v43 = vpop.f32.mrf.mxu0 }
 0x1a9   : > { %v2753_v44 = vpack.c.bf16 %v1359_v0, %v1359_v0  ;;  %v1357_v46 = vmax.f32 %v1327_v23, 0.0  ;;  %v1338_v42 = vadd.f32 %v2784_v43, %v3472_v35 }
 0x1aa   : > { %v1329_v31 = vpop.f32.mrf.mxu0 }
 0x1ab   : > { %v1484_v22 = vshrl.u32 %v2753_v44, 16  ;;  %v2751_v47 = vpack.c.bf16 %v1357_v46, %v1357_v46  ;;  %v1360_v48 = vmax.f32 %v1338_v42, 0.0  ;;  %v1330_v45 = vadd.f32 %v3472_v35, %v1329_v31 }
 0x1ac   : > { %v1487_v50 = vshll.u32 %v2753_v44, 16 }
 0x1ad   : > { %v1486_v49 = vrot.slane %v1484_v22, 7  ;;  %v1468_v51 = vshrl.u32 %v2751_v47, 16  ;;  %v2754_v59 = vpack.c.bf16 %v1360_v48, %v1360_v48  ;;  %v1471_v63 = vshll.u32 %v2751_v47, 16 }
 0x1ae   : > { %v1358_v39 = vmax.f32 %v1330_v45, 0.0 }
 0x1af   : > { %v1489_v55 = vor.u32 %v1487_v50, %v1486_v49  ;;  %v1490_v56 = vrot.slane %v1486_v49, 4  ;;  %v1470_v4 = vrot.slane %v1468_v51, 7  ;;  %v1492_v5 = vshrl.u32 %v2754_v59, 16 }
 0x1b0   : > { %v2752_v6 = vpack.c.bf16 %v1358_v39, %v1358_v39  ;;  %v1495_v29 = vshll.u32 %v2754_v59, 16 }
 0x1b1   : > { %v1563_v1 = vsel %vm3480_vm2, %v1489_v55, %v1562_v61  ;;  %v1566_v8 = vsel %vm3409_vm5, %v1490_v56, %v1565_v62  ;;  %v1473_v11 = vor.u32 %v1471_v63, %v1470_v4  ;;  %v1474_v12 = vrot.slane %v1470_v4, 4 }
 0x1b2   : > { %1564 = vst [vmem:[#allocation3 + $0x18] sm:$0xf] %v1563_v1  ;;  %1567 = vst [vmem:[#allocation3 + $0x1c] sm:$0x1] %v1566_v8  ;;  %v1494_v15 = vrot.slane %v1492_v5, 7  ;;  %v1476_v53 = vshrl.u32 %v2752_v6, 16 }
 0x1b3   : > { %v1551_v10 = vsel %vm3480_vm2, %v1473_v11, %v1550_v57  ;;  %v1554_v54 = vsel %vm3409_vm5, %v1474_v12, %v1553_v52  ;;  %v1479_v19 = vshll.u32 %v2752_v6, 16 }
 0x1b4   : > { %1552 = vst [vmem:[#allocation3 + $0x8] sm:$0xf] %v1551_v10  ;;  %1555 = vst [vmem:[#allocation3 + $0xc] sm:$0x1] %v1554_v54  ;;  %v1497_v58 = vor.u32 %v1495_v29, %v1494_v15  ;;  %v1498_v18 = vrot.slane %v1494_v15, 4  ;;  %v1478_v13 = vrot.slane %v1476_v53, 7 }
 0x1b6   : > { %v1569_v20 = vsel %vm3480_vm2, %v1497_v58, %v1568_v16  ;;  %v1572_v3 = vsel %vm3409_vm5, %v1498_v18, %v1571_v17  ;;  %v1481_v21 = vor.u32 %v1479_v19, %v1478_v13  ;;  %v1482_v24 = vrot.slane %v1478_v13, 4 }
 0x1b7   : > { %1570 = vst [vmem:[#allocation3 + $0x20] sm:$0xf] %v1569_v20  ;;  %1573 = vst [vmem:[#allocation3 + $0x24] sm:$0x1] %v1572_v3 }
 0x1b8   : > { %v1557_v25 = vsel %vm3480_vm2, %v1481_v21, %v1556_v40  ;;  %v1560_v26 = vsel %vm3409_vm5, %v1482_v24, %v1559_v14 }
 0x1b9   : > { %1558 = vst [vmem:[#allocation3 + $0x10] sm:$0xf] %v1557_v25  ;;  %1561 = vst [vmem:[#allocation3 + $0x14] sm:$0x1] %v1560_v26  ;;  %v1648_v27 = vld [vmem:[#allocation3 + $0x18] sm:$0xf] }
 0x1ba   : > { %v1624_v7 = vld [vmem:[#allocation3 + $0x18] sm:$0xf]  ;;  %v1609_v28 = vld [vmem:[#allocation3 + $0x1c] sm:$0x1]  ;;  %v2711_v33 = vcombine.low %v1648_v27, %v1648_v27 }
 0x1bb   : > { %v2688_v34 = vcombine.low %v1624_v7, %v1624_v7  ;;  %v1617_v32 = vld [vmem:[#allocation3 + $0x18] sm:$0xe]  ;;  %v1656_v30 = vld [vmem:[#allocation3 + $0x1c] sm:$0x1]  ;;  %v3500_v37 = vld [vmem:[#allocation3 + $0x8] sm:$0xf] }
 0x1bc   : > { %v2681_v36 = vcombine.low %v1617_v32, %v1609_v28  ;;  %v1664_v38 = vld [vmem:[#allocation3 + $0x18] sm:$0xe]  ;;  %v1632_v0 = vld [vmem:[#allocation3 + $0x1c] sm:$0x1]  ;;  %2041 = vrot.lane.b32.xlu1 %v2711_v33, %s2983_s13  ;;  %v2686_v46 = vcombine.low %v3500_v37, %v3500_v37  ;;  %v1630_v22 = vld [vmem:[#allocation3 + $0xc] sm:$0x1]  ;;  %v2719_v12 = vcombine.low %v1648_v27, %v1656_v30 }
 0x1bd   : > { %1859 = vrot.lane.b32.xlu0 %v2688_v34, %s2980_s29  ;;  %v1640_v23 = vld [vmem:[#allocation3 + $0x18] sm:$0xe]  ;;  %v2727_v42 = vcombine.low %v1664_v38, %v1656_v30  ;;  %v1638_v47 = vld [vmem:[#allocation3 + $0x8] sm:$0xe]  ;;  %v1607_v48 = vld [vmem:[#allocation3 + $0xc] sm:$0x1]  ;;  %v2696_v50 = vcombine.low %v1624_v7, %v1632_v0  ;;  %v2694_v25 = vcombine.low %v3500_v37, %v1630_v22 }
 0x1be   : > { %v1810_v43 = vrot.slane %v2681_v36, 1  ;;  %v3504_v44 = vld [vmem:[#allocation3 + $0x18] sm:$0xf]  ;;  %v2704_v31 = vcombine.low %v1640_v23, %v1632_v0  ;;  %v1615_v45 = vld [vmem:[#allocation3 + $0x8] sm:$0xe]  ;;  %v2702_v61 = vcombine.low %v1638_v47, %v1630_v22  ;;  %v2089_v19 = vshll.u32 %v2719_v12, 16 }
 0x1bf   : > { %v2673_v49 = vcombine.low %v3504_v44, %v1609_v28  ;;  %v2176_v51 = vrot.slane %v2727_v42, 1  ;;  %v2679_v62 = vcombine.low %v1615_v45, %v1607_v48  ;;  %v1912_v55 = vshll.u32 %v2696_v50, 16  ;;  %v3513_v4 = vld [vmem:[#allocation3 + $0x20] sm:$0xf]  ;;  %v3525_v15 = vld [vmem:[#allocation3 + $0x8] sm:$0xf] }
 0x1c0   : > { %1821 = vrot.lane.b32.xlu1 %v1810_v43, %s2979_s28  ;;  %v1993_v59 = vrot.slane %v2704_v31, 1  ;;  %v1991_v63 = vrot.slane %v2702_v61, 1  ;;  %v3515_v5 = vld [vmem:[#allocation3 + $0x20] sm:$0xf]  ;;  %v2712_v57 = vcombine.low %v3513_v4, %v3513_v4  ;;  %v1910_v8 = vshrl.u32 %v2696_v50, 16 }
 0x1c1   : > { %1855 = vrot.lane.b32.xlu0 %v2686_v46, %s2980_s29  ;;  %v1808_v39 = vrot.slane %v2679_v62, 1  ;;  %v1735_v56 = vshll.u32 %v2673_v49, 16  ;;  %v2689_v52 = vcombine.low %v3515_v5, %v3515_v5  ;;  %v1914_v6 = vrot.slane %v1912_v55, 1  ;;  %v3527_v10 = vld [vmem:[#allocation3 + $0x10] sm:$0xf] }
 0x1c2   : > { %v1733_v11 = vshrl.u32 %v2673_v49, 16  ;;  %v3529_v54 = vld [vmem:[#allocation3 + $0x10] sm:$0xf]  ;;  %v3531_v16 = vld [vmem:[#allocation3 + $0x24] sm:$0x1]  ;;  %v2671_v13 = vcombine.low %v3525_v15, %v1607_v48  ;;  %v2710_v40 = vcombine.low %v3527_v10, %v3527_v10  ;;  %v2091_v26 = vrot.slane %v2089_v19, 1 }
 0x1c3   : > { %v1737_v1 = vrot.slane %v1735_v56, 1  ;;  %v1915_v29 = vor.u32 %v1914_v6, %v1910_v8  ;;  %v1665_v17 = vld [vmem:[#allocation3 + $0x20] sm:$0xe]  ;;  %v3533_v58 = vld [vmem:[#allocation3 + $0x24] sm:$0x1]  ;;  %v2687_v14 = vcombine.low %v3529_v54, %v3529_v54  ;;  %v2087_v34 = vshrl.u32 %v2719_v12, 16 }
 0x1c4   : > { %2185 = vrot.lane.b32.xlu1 %v2176_v51, %s2985_s17  ;;  %v1641_v18 = vld [vmem:[#allocation3 + $0x20] sm:$0xe]  ;;  %v2728_v20 = vcombine.low %v1665_v17, %v3531_v16  ;;  %v3544_v21 = vld [vmem:[#allocation3 + $0x24] sm:$0x1]  ;;  %v1721_v33 = vshll.u32 %v2671_v13, 16  ;;  %v1898_v37 = vshll.u32 %v2694_v25, 16 }
 0x1c5   : > { %2003 = vrot.lane.b32.xlu0 %v1993_v59, %s2986_s20  ;;  %v1738_v53 = vor.u32 %v1737_v1, %v1733_v11  ;;  %v2705_v3 = vcombine.low %v1641_v18, %v3533_v58  ;;  %v1618_v24 = vld [vmem:[#allocation3 + $0x20] sm:$0xe]  ;;  %v3550_v32 = vld [vmem:[#allocation3 + $0x14] sm:$0x1]  ;;  %v1616_v30 = vld [vmem:[#allocation3 + $0x10] sm:$0xe]  ;;  %v2092_v36 = vor.u32 %v2091_v26, %v2087_v34 }
 0x1c6   : > { %v2177_v27 = vrot.slane %v2728_v20, 1  ;;  %v2682_v28 = vcombine.low %v1618_v24, %v3544_v21  ;;  %v2680_v0 = vcombine.low %v1616_v30, %v3550_v32  ;;  %v1723_v23 = vrot.slane %v1721_v33, 1  ;;  %v3555_v43 = vld [vmem:[#allocation3 + $0x14] sm:$0x1]  ;;  %v1639_v46 = vld [vmem:[#allocation3 + $0x10] sm:$0xe] }
 0x1c7   : > { %v1994_v7 = vrot.slane %v2705_v3, 1  ;;  %v1719_v42 = vshrl.u32 %v2671_v13, 16  ;;  %v1900_v47 = vrot.slane %v1898_v37, 1  ;;  %v2703_v48 = vcombine.low %v1639_v46, %v3555_v43  ;;  %v3560_v45 = vld [vmem:[#allocation3 + $0x14] sm:$0x1] }
 0x1c8   : > { %1817 = vrot.lane.b32.xlu1 %v1808_v39, %s2979_s28  ;;  %v1811_v38 = vrot.slane %v2682_v28, 1  ;;  %v1809_v31 = vrot.slane %v2680_v0, 1  ;;  %v1663_v49 = vld [vmem:[#allocation3 + $0x10] sm:$0xe]  ;;  %v1896_v51 = vshrl.u32 %v2694_v25, 16  ;;  %v2720_v28 = vcombine.low %v3513_v4, %v3531_v16 }
 0x1c9   : > { %1999 = vrot.lane.b32.xlu0 %v1991_v63, %s2986_s20  ;;  %v1724_v22 = vor.u32 %v1723_v23, %v1719_v42  ;;  %v1992_v63 = vrot.slane %v2703_v48, 1  ;;  %v2726_v39 = vcombine.low %v1663_v49, %v3560_v45  ;;  %v1589_v20 = vld [vmem:[#allocation3 + $0x3c] sm:$0x1]  ;;  %v1574_v33 = vld [vmem:[#allocation3 + $0x28] sm:$0xf] }
 0x1ca   : > { %v1901_v62 = vor.u32 %v1900_v47, %v1896_v51  ;;  %v1577_v34 = vld [vmem:[#allocation3 + $0x2c] sm:$0x1]  ;;  %v3580_v37 = vld [vmem:[#allocation3 + $0x20] sm:$0xf]  ;;  %v1580_v51 = vld [vmem:[#allocation3 + $0x30] sm:$0xf] }
 0x1cb   : > { %v2175_v11 = vrot.slane %v2726_v39, 1  ;;  %v1592_v42 = vld [vmem:[#allocation3 + $0x40] sm:$0xf]  ;;  %v2094_v60 = vshrl.u32 %v2720_v28, 16 }
 0x1cc   : > { %1861 = vrot.lane.b32.xlu1 %v2689_v52, %s2980_s29 }
 0x1cd   : > { %2043 = vrot.lane.b32.xlu0 %v2712_v57, %s2983_s13 }
 0x1d0   : > { %1773 = vrot.lane.b32.xlu1 %v1738_v53, %s2975_s24 }
 0x1d1   : > { %1955 = vrot.lane.b32.xlu0 %v1915_v29, %s2982_s6 }
 0x1d4   : > { %1857 = vrot.lane.b32.xlu1 %v2687_v14, %s2980_s29  ;;  %v1586_v14 = vld [vmem:[#allocation3 + $0x38] sm:$0xf] }
 0x1d5   : > { %2039 = vrot.lane.b32.xlu0 %v2710_v40, %s2983_s13 }
 0x1d8   : > { %2005 = vrot.lane.b32.xlu1 %v1994_v7, %s2986_s20 }
 0x1d9   : > { %2187 = vrot.lane.b32.xlu0 %v2177_v27, %s2985_s17 }
 0x1dc   : > { %2137 = vrot.lane.b32.xlu1 %v2092_v36, %s2984_s14 }
 0x1dd   : > { %1823 = vrot.lane.b32.xlu0 %v1811_v38, %s2979_s28 }
 0x1e0   : > { %1769 = vrot.lane.b32.xlu1 %v1724_v22, %s2975_s24  ;;  %v2787_v50 = vpop.f32.mrf.mxu0 }
 0x1e1   : > { %1819 = vrot.lane.b32.xlu0 %v1809_v31, %s2979_s28  ;;  %v1351_v59 = vadd.f32 %v2787_v50, %v3472_v35  ;;  %v1595_v31 = vld [vmem:[#allocation3 + $0x44] sm:$0x1]  ;;  %v2674_v50 = vcombine.low %v3580_v37, %v3544_v21 }
 0x1e2   : > { %v1342_v61 = vpop.f32.mrf.mxu0 }
 0x1e3   : > { %v1363_v55 = vmax.f32 %v1351_v59, 0.0  ;;  %v1343_v56 = vadd.f32 %v3472_v35, %v1342_v61  ;;  %v1583_v59 = vld [vmem:[#allocation3 + $0x34] sm:$0x1] }
 0x1e4   : > { %2001 = vrot.lane.b32.xlu1 %v1992_v63, %s2986_s20  ;;  %v2788_v57 = vpop.f32.mrf.mxu0 }
 0x1e5   : > { %1951 = vrot.lane.b32.xlu0 %v1901_v62, %s2982_s6  ;;  %v2757_v52 = vpack.c.bf16 %v1363_v55, %v1363_v55  ;;  %v1361_v6 = vmax.f32 %v1343_v56, 0.0  ;;  %v1354_v1 = vadd.f32 %v2788_v57, %v3472_v35  ;;  %v2096_v62 = vshll.u32 %v2720_v28, 16 }
 0x1e6   : > { %v1345_v8 = vpop.f32.mrf.mxu0 }
 0x1e7   : > { %v1516_v12 = vshrl.u32 %v2757_v52, 16  ;;  %v2755_v29 = vpack.c.bf16 %v1361_v6, %v1361_v6  ;;  %v1364_v53 = vmax.f32 %v1354_v1, 0.0  ;;  %v1346_v17 = vadd.f32 %v3472_v35, %v1345_v8 }
 0x1e8   : > { %v1519_v13 = vshll.u32 %v2757_v52, 16  ;;  %v2697_v35 = vcombine.low %v3515_v5, %v3533_v58 }
 0x1e9   : > { %2183 = vrot.lane.b32.xlu0 %v2175_v11, %s2985_s17  ;;  %v1518_v18 = vrot.slane %v1516_v12, 7  ;;  %v1500_v19 = vshrl.u32 %v2755_v29, 16  ;;  %v2758_v40 = vpack.c.bf16 %v1364_v53, %v1364_v53  ;;  %v1503_v3 = vshll.u32 %v2755_v29, 16  ;;  %v3606_v53 = vld [vmem:[#allocation3 + $0x10] sm:$0xf] }
 0x1ea   : > { %v1362_v24 = vmax.f32 %v1346_v17, 0.0  ;;  %v1919_v61 = vshll.u32 %v2697_v35, 16  ;;  %v2098_v12 = vrot.slane %v2096_v62, 1  ;;  %v1742_v29 = vshll.u32 %v2674_v50, 16  ;;  %v2960_v62 = vld [vmem:[%s3838_s3 + $0x20] ss:$0 sps:$4 sm:$0xff]  }
 0x1eb   : > { %v1521_v25 = vor.u32 %v1519_v13, %v1518_v18  ;;  %v1522_v26 = vrot.slane %v1518_v18, 4  ;;  %v1502_v27 = vrot.slane %v1500_v19, 7  ;;  %v1524_v7 = vshrl.u32 %v2758_v40, 16  ;;  %2808 = vmatprep.subr.msk.bf16.mxu1 %vm2415_vm4, %v2960_v62 }
 0x1ec   : > { %v2756_v30 = vpack.c.bf16 %v1362_v24, %v1362_v24  ;;  %v1527_v4 = vshll.u32 %v2758_v40, 16  ;;  %v1921_v1 = vrot.slane %v1919_v61, 1  ;;  %v1917_v41 = vshrl.u32 %v2697_v35, 16 }
 0x1ed   : > { %v1587_v36 = vsel %vm3480_vm2, %v1521_v25, %v1586_v14  ;;  %v1590_v38 = vsel %vm3409_vm5, %v1522_v26, %v1589_v20  ;;  %v1505_v0 = vor.u32 %v1503_v3, %v1502_v27  ;;  %v1506_v23 = vrot.slane %v1502_v27, 4 }
 0x1ee   : > { %1588 = vst [vmem:[#allocation3 + $0x38] sm:$0xf] %v1587_v36  ;;  %1591 = vst [vmem:[#allocation3 + $0x3c] sm:$0x1] %v1590_v38  ;;  %v1526_v46 = vrot.slane %v1524_v7, 7  ;;  %v1508_v16 = vshrl.u32 %v2756_v30, 16  ;;  %v2695_v17 = vcombine.low %v3529_v54, %v3555_v43  ;;  %v1922_v18 = vor.u32 %v1921_v1, %v1917_v41 }
 0x1ef   : > { %v1575_v5 = vsel %vm3480_vm2, %v1505_v0, %v1574_v33  ;;  %v1578_v58 = vsel %vm3409_vm5, %v1506_v23, %v1577_v34  ;;  %v1511_v49 = vshll.u32 %v2756_v30, 16  ;;  %v2099_v13 = vor.u32 %v2098_v12, %v2094_v60  ;;  %v2961_v1 = vld [vmem:[%s3838_s3 + $0x18] sm:$0xff]   ;;  %v2962_v60 = vld [vmem:[%s3838_s3 + $0x10] sm:$0xff]  }
 0x1f0   : > { %1576 = vst [vmem:[#allocation3 + $0x28] sm:$0xf] %v1575_v5  ;;  %1579 = vst [vmem:[#allocation3 + $0x2c] sm:$0x1] %v1578_v58  ;;  %v1529_v22 = vor.u32 %v1527_v4, %v1526_v46  ;;  %v1530_v47 = vrot.slane %v1526_v46, 4  ;;  %v1510_v48 = vrot.slane %v1508_v16, 7  ;;  %v2672_v24 = vcombine.low %v3606_v53, %v3550_v32 }
 0x1f1   : > { %v1744_v19 = vrot.slane %v1742_v29, 1  ;;  %v1740_v3 = vshrl.u32 %v2674_v50, 16  ;;  %v1905_v25 = vshll.u32 %v2695_v17, 16  ;;  %v2718_v33 = vcombine.low %v3527_v10, %v3560_v45 }
 0x1f2   : > { %v1593_v63 = vsel %vm3480_vm2, %v1529_v22, %v1592_v42  ;;  %v1596_v39 = vsel %vm3409_vm5, %v1530_v47, %v1595_v31  ;;  %v1513_v55 = vor.u32 %v1511_v49, %v1510_v48  ;;  %v1514_v56 = vrot.slane %v1510_v48, 4 }
 0x1f3   : > { %1594 = vst [vmem:[#allocation3 + $0x40] sm:$0xf] %v1593_v63  ;;  %1597 = vst [vmem:[#allocation3 + $0x44] sm:$0x1] %v1596_v39  ;;  %v1745_v26 = vor.u32 %v1744_v19, %v1740_v3  ;;  %v1728_v35 = vshll.u32 %v2672_v24, 16  ;;  %v1907_v34 = vrot.slane %v1905_v25, 1 }
 0x1f4   : > { %v1581_v57 = vsel %vm3480_vm2, %v1513_v55, %v1580_v51  ;;  %v1584_v21 = vsel %vm3409_vm5, %v1514_v56, %v1583_v59  ;;  %v1903_v23 = vshrl.u32 %v2695_v17, 16  ;;  %v2082_v46 = vshll.u32 %v2718_v33, 16  ;;  %v2963_v3 = vld [vmem:[%s3838_s3 + $0x8] sm:$0xff]  }
 0x1f5   : > { %1582 = vst [vmem:[#allocation3 + $0x30] sm:$0xf] %v1581_v57  ;;  %1585 = vst [vmem:[#allocation3 + $0x34] sm:$0x1] %v1584_v21  ;;  %v3596_v52 = vld [vmem:[#allocation3 + $0x38] sm:$0xf] }
 0x1f6   : > { %v3598_v6 = vld [vmem:[#allocation3 + $0x38] sm:$0xf]  ;;  %v2715_v8 = vcombine.low %v3596_v52, %v3596_v52  ;;  %v1613_v14 = vld [vmem:[#allocation3 + $0x3c] sm:$0x1]  ;;  %v1730_v4 = vrot.slane %v1728_v35, 1  ;;  %v1908_v16 = vor.u32 %v1907_v34, %v1903_v23  ;;  %v1726_v31 = vshrl.u32 %v2672_v24, 16 }
 0x1f7   : > { %v2692_v11 = vcombine.low %v3598_v6, %v3598_v6  ;;  %v3610_v40 = vld [vmem:[#allocation3 + $0x28] sm:$0xf]  ;;  %v1621_v20 = vld [vmem:[#allocation3 + $0x38] sm:$0xe]  ;;  %v1636_v27 = vld [vmem:[#allocation3 + $0x3c] sm:$0x1] }
 0x1f8   : > { %2049 = vrot.lane.b32.xlu1 %v2715_v8, %s2983_s13  ;;  %v2713_v54 = vcombine.low %v3610_v40, %v3610_v40  ;;  %v2685_v43 = vcombine.low %v1621_v20, %v1613_v14  ;;  %v3618_v7 = vld [vmem:[#allocation3 + $0x28] sm:$0xf]  ;;  %v1644_v28 = vld [vmem:[#allocation3 + $0x38] sm:$0xe]  ;;  %v3626_v38 = vld [vmem:[#allocation3 + $0x2c] sm:$0x1]  ;;  %v1731_v49 = vor.u32 %v1730_v4, %v1726_v31  ;;  %v2700_v63 = vcombine.low %v3598_v6, %v1636_v27 }
 0x1f9   : > { %1867 = vrot.lane.b32.xlu0 %v2692_v11, %s2980_s29  ;;  %v2690_v30 = vcombine.low %v3618_v7, %v3618_v7  ;;  %v2708_v36 = vcombine.low %v1644_v28, %v1636_v27  ;;  %v1666_v0 = vld [vmem:[#allocation3 + $0x28] sm:$0xe]  ;;  %v3631_v45 = vld [vmem:[#allocation3 + $0x38] sm:$0xf]  ;;  %v3633_v58 = vld [vmem:[#allocation3 + $0x2c] sm:$0x1] }
 0x1fa   : > { %v1814_v32 = vrot.slane %v2685_v43, 1  ;;  %v2729_v10 = vcombine.low %v1666_v0, %v3626_v38  ;;  %v1619_v42 = vld [vmem:[#allocation3 + $0x28] sm:$0xe]  ;;  %v2084_v22 = vrot.slane %v2082_v46, 1  ;;  %v2677_v47 = vcombine.low %v3631_v45, %v1613_v14  ;;  %v1634_v59 = vld [vmem:[#allocation3 + $0x2c] sm:$0x1] }
 0x1fb   : > { %v1997_v5 = vrot.slane %v2708_v36, 1  ;;  %v2683_v50 = vcombine.low %v1619_v42, %v3633_v58  ;;  %v2080_v51 = vshrl.u32 %v2718_v33, 16  ;;  %v1642_v61 = vld [vmem:[#allocation3 + $0x28] sm:$0xe]  ;;  %v2417_v21 = vsel %vm2415_vm4, %v2960_v62, 0 }
 0x1fc   : > { %1957 = vrot.lane.b32.xlu1 %v1922_v18, %s2982_s6  ;;  %v2178_v48 = vrot.slane %v2729_v10, 1  ;;  %v1763_v55 = vshll.u32 %v2677_v47, 16  ;;  %v2706_v57 = vcombine.low %v1642_v61, %v1634_v59  ;;  %v3648_v8 = vld [vmem:[#allocation3 + $0x40] sm:$0xf]  ;;  %2790 = vmatpush3.bf16.msra.mxu1 %v2417_v21  ;;  %v3652_v11 = vld [vmem:[#allocation3 + $0x3c] sm:$0x1]  ;;  %v2698_v28 = vcombine.low %v3618_v7, %v1634_v59 }
 0x1fd   : > { %2139 = vrot.lane.b32.xlu0 %v2099_v13, %s2984_s14  ;;  %v2085_v39 = vor.u32 %v2084_v22, %v2080_v51  ;;  %v1812_v56 = vrot.slane %v2683_v50, 1  ;;  %2791 = vmatprep.subr.bf16.mxu1 %v2961_v1  ;;  %v1940_v6 = vshll.u32 %v2700_v63, 16  ;;  %v2693_v41 = vcombine.low %v3648_v8, %v3648_v8  ;;  %v1653_v17 = vld [vmem:[#allocation3 + $0x40] sm:$0xf]  ;;  %v3666_v24 = vld [vmem:[#allocation3 + $0x30] sm:$0xf] }
 0x1fe   : > { %v1765_v12 = vrot.slane %v1763_v55, 1  ;;  %v1995_v29 = vrot.slane %v2706_v57, 1  ;;  %v1761_v18 = vshrl.u32 %v2677_v47, 16  ;;  %v2723_v13 = vcombine.low %v3596_v52, %v3652_v11  ;;  %v1637_v25 = vld [vmem:[#allocation3 + $0x44] sm:$0x1]  ;;  %v2964_v7 = vld [vmem:[%s3838_s3] sm:$0xff]  }
 0x1ff   : > { %v1942_v19 = vrot.slane %v1940_v6, 1  ;;  %v2716_v14 = vcombine.low %v1653_v17, %v1653_v17  ;;  %v2721_v52 = vcombine.low %v3610_v40, %v3626_v38  ;;  %v3672_v27 = vld [vmem:[#allocation3 + $0x28] sm:$0xf]  ;;  %v2691_v33 = vcombine.low %v3666_v24, %v3666_v24  ;;  %v1620_v36 = vld [vmem:[#allocation3 + $0x30] sm:$0xe] }
 0x200   : > { %2045 = vrot.lane.b32.xlu1 %v2713_v54, %s2983_s13  ;;  %2792 = vmatpush3.bf16.msra.mxu1 %v2961_v1  ;;  %v1766_v20 = vor.u32 %v1765_v12, %v1761_v18  ;;  %v1938_v54 = vshrl.u32 %v2700_v63, 16  ;;  %v2117_v43 = vshll.u32 %v2723_v13, 16  ;;  %v2675_v38 = vcombine.low %v3672_v27, %v3633_v58  ;;  %v3684_v23 = vld [vmem:[#allocation3 + $0x44] sm:$0x1]  ;;  %v1659_v58 = vld [vmem:[#allocation3 + $0x34] sm:$0x1] }
 0x201   : > { %1775 = vrot.lane.b32.xlu0 %v1745_v26, %s2975_s24  ;;  %2793 = vmatprep.subr.bf16.mxu1 %v2962_v60  ;;  %v1645_v26 = vld [vmem:[#allocation3 + $0x40] sm:$0xe]  ;;  %v2103_v40 = vshll.u32 %v2721_v52, 16  ;;  %v2115_v10 = vshrl.u32 %v2723_v13, 16  ;;  %v2724_v31 = vcombine.low %v1653_v17, %v3684_v23  ;;  %v1667_v51 = vld [vmem:[#allocation3 + $0x30] sm:$0xe] }
 0x202   : > { %v1943_v35 = vor.u32 %v1942_v19, %v1938_v54  ;;  %v2709_v34 = vcombine.low %v1645_v26, %v1637_v25  ;;  %v2119_v0 = vrot.slane %v2117_v43, 1  ;;  %v1749_v59 = vshll.u32 %v2675_v38, 16  ;;  %v3691_v61 = vld [vmem:[#allocation3 + $0x30] sm:$0xf]  ;;  %v1635_v12 = vld [vmem:[#allocation3 + $0x34] sm:$0x1] }
 0x203   : > { %v2105_v42 = vrot.slane %v2103_v40, 1  ;;  %v2101_v62 = vshrl.u32 %v2721_v52, 16  ;;  %v1924_v63 = vshrl.u32 %v2698_v28, 16  ;;  %v2730_v55 = vcombine.low %v1667_v51, %v1659_v58 }
 0x204   : > { %1829 = vrot.lane.b32.xlu1 %v1814_v32, %s2979_s28  ;;  %2794 = vmatpush3.bf16.msra.mxu1 %v2962_v60  ;;  %v1651_v32 = vld [vmem:[#allocation3 + $0x30] sm:$0xf]  ;;  %v1998_v4 = vrot.slane %v2709_v34, 1  ;;  %v2120_v47 = vor.u32 %v2119_v0, %v2115_v10  ;;  %v1751_v6 = vrot.slane %v1749_v59, 1  ;;  %v1747_v17 = vshrl.u32 %v2675_v38, 16 }
 0x205   : > { %1863 = vrot.lane.b32.xlu0 %v2690_v30, %s2980_s29  ;;  %2795 = vmatprep.subr.bf16.mxu1 %v2963_v3  ;;  %v1612_v30 = vld [vmem:[#allocation3 + $0x34] sm:$0x1]  ;;  %v2714_v46 = vcombine.low %v1651_v32, %v1651_v32  ;;  %v2106_v1 = vor.u32 %v2105_v42, %v2101_v62  ;;  %v2722_v18 = vcombine.low %v1651_v32, %v1659_v58  ;;  %v2179_v13 = vrot.slane %v2730_v55, 1  ;;  %v1668_v10 = vld [vmem:[#allocation3 + $0x38] sm:$0xe] }
 0x206   : > { %v2676_v57 = vcombine.low %v3691_v61, %v1612_v30  ;;  %v2122_v26 = vshrl.u32 %v2724_v31, 16  ;;  %v1670_v58 = vld [vmem:[#allocation3 + $0x48] sm:$0xe]  ;;  %v2731_v59 = vcombine.low %v1668_v10, %v3652_v11 }
 0x207   : > { %v2110_v32 = vshll.u32 %v2722_v18, 16  ;;  %v2108_v42 = vshrl.u32 %v2722_v18, 16  ;;  %v2733_v62 = vcombine.low %v1670_v58, %v3446_v9 }
 0x208   : > { %1953 = vrot.lane.b32.xlu1 %v1908_v16, %s2982_s6  ;;  %2796 = vmatpush3.bf16.msra.mxu1 %v2963_v3  ;;  %v2684_v16 = vcombine.low %v1620_v36, %v1612_v30  ;;  %v1756_v3 = vshll.u32 %v2676_v57, 16  ;;  %v1754_v36 = vshrl.u32 %v2676_v57, 16 }
 0x209   : > { %2011 = vrot.lane.b32.xlu0 %v1997_v5, %s2986_s20  ;;  %v1926_v5 = vshll.u32 %v2698_v28, 16  ;;  %2797 = vmatprep.subr.bf16.mxu1 %v2964_v7  ;;  %v2182_v57 = vrot.slane %v2733_v62, 1 }
 0x20a   : > { %v1813_v22 = vrot.slane %v2684_v16, 1 }
 0x20b   : > { %v1928_v50 = vrot.slane %v1926_v5, 1  ;;  %v1669_v5 = vld [vmem:[#allocation3 + $0x40] sm:$0xe] }
 0x20c   : > { %2189 = vrot.lane.b32.xlu1 %v2178_v48, %s2985_s17  ;;  %2798 = vmatpush3.bf16.msra.mxu1 %v2964_v7  ;;  %v3689_v48 = vpop.permute.xlu1 %2053  ;;  %v2732_v51 = vcombine.low %v1669_v5, %v3684_v23 }
 0x20d   : > { %1771 = vrot.lane.b32.xlu0 %v1731_v49, %s2975_s24  ;;  %v1768_v49 = vpop.permute.xlu0 %1767  ;;  %v1929_v21 = vor.u32 %v1928_v50, %v1924_v63 }
 0x20e   : > { %v2201_v54 = vsel %vm1109_vm9, %v3439_v2, %v1768_v49  ;;  %v2181_v55 = vrot.slane %v2732_v51, 1 }
 0x210   : > { %1825 = vrot.lane.b32.xlu1 %v1812_v56, %s2979_s28  ;;  %v2124_v56 = vshll.u32 %v2724_v31, 16 }
 0x211   : > { %2135 = vrot.lane.b32.xlu0 %v2085_v39, %s2984_s14  ;;  %v2701_v39 = vcombine.low %v3648_v8, %v1637_v25  ;;  %v1816_v60 = vpop.permute.xlu0 %1815 }
 0x212   : > { %v2126_v8 = vrot.slane %v2124_v56, 1  ;;  %v2224_v30 = vsel %vm1143_vm11, %v2201_v54, %v1816_v60  ;;  %v2180_v56 = vrot.slane %v2731_v59, 1 }
 0x213   : > { %v1947_v25 = vshll.u32 %v2701_v39, 16  ;;  %v1945_v0 = vshrl.u32 %v2701_v39, 16 }
 0x214   : > { %1869 = vrot.lane.b32.xlu1 %v2693_v41, %s2980_s29  ;;  %v3699_v41 = vpop.permute.xlu1 %2149  ;;  %v2127_v43 = vor.u32 %v2126_v8, %v2122_v26 }
 0x215   : > { %2007 = vrot.lane.b32.xlu0 %v1995_v29, %s2986_s20  ;;  %v1643_v29 = vld [vmem:[#allocation3 + $0x30] sm:$0xe]  ;;  %v1949_v34 = vrot.slane %v1947_v25, 1 }
 0x216   : > { %v2707_v19 = vcombine.low %v1643_v29, %v1635_v12 }
 0x217   : > { %v1950_v7 = vor.u32 %v1949_v34, %v1945_v0 }
 0x218   : > { %1781 = vrot.lane.b32.xlu1 %v1766_v20, %s2975_s24  ;;  %v2699_v20 = vcombine.low %v3666_v24, %v1635_v12  ;;  %v1996_v52 = vrot.slane %v2707_v19, 1 }
 0x219   : > { %2051 = vrot.lane.b32.xlu0 %v2716_v14, %s2983_s13  ;;  %v1752_v14 = vor.u32 %v1751_v6, %v1747_v17 }
 0x21a   : > { %v1933_v24 = vshll.u32 %v2699_v20, 16  ;;  %v1931_v31 = vshrl.u32 %v2699_v20, 16 }
 0x21c   : > { %1865 = vrot.lane.b32.xlu1 %v2691_v33, %s2980_s29  ;;  %v1758_v33 = vrot.slane %v1756_v3, 1  ;;  %s2585_s29 = sshll.u32 %s3854_s19, 3 }
 0x21d   : > { %1963 = vrot.lane.b32.xlu0 %v1943_v35, %s2982_s6  ;;  %s222_s11 = scalar_lea.vmem %s3840_s5, %s2585_s29 }
 0x21e   : > { %v1759_v38 = vor.u32 %v1758_v33, %v1754_v36 }
 0x220   : > { %2013 = vrot.lane.b32.xlu1 %v1998_v4, %s2986_s20  ;;  %v1935_v4 = vrot.slane %v1933_v24, 1 }
 0x221   : > { %2047 = vrot.lane.b32.xlu0 %v2714_v46, %s2983_s13  ;;  %v2112_v46 = vrot.slane %v2110_v32, 1 }
 0x222   : > { %v1936_v50 = vor.u32 %v1935_v4, %v1931_v31 }
 0x223   : > { %v2113_v49 = vor.u32 %v2112_v46, %v2108_v42 }
 0x224   : > { %2145 = vrot.lane.b32.xlu1 %v2120_v47, %s2984_s14 }
 0x225   : > { %1827 = vrot.lane.b32.xlu0 %v1813_v22, %s2979_s28 }
 0x228   : > { %2141 = vrot.lane.b32.xlu1 %v2106_v1, %s2984_s14 }
 0x229   : > { %1959 = vrot.lane.b32.xlu0 %v1929_v21, %s2982_s6 }
 0x22c   : > { %1777 = vrot.lane.b32.xlu1 %v1752_v14, %s2975_s24 }
 0x22d   : > { %2191 = vrot.lane.b32.xlu0 %v2179_v13, %s2985_s17 }
 0x22e   : > { %v3706_v28 = vpop.permute.xlu1 %2041 }
 0x22f   : > { %v3708_v35 = vpop.permute.xlu0 %1859 }
 0x230   : > { %2009 = vrot.lane.b32.xlu1 %v1996_v52, %s2986_s20 }
 0x231   : > { %2147 = vrot.lane.b32.xlu0 %v2127_v43, %s2984_s14 }
 0x232   : > { %v1822_v40 = vpop.permute.xlu1 %1821 }
 0x233   : > { %v1856_v2 = vpop.permute.xlu0 %1855 }
 0x234   : > { %v2240_v16 = vsel %vm1177_vm13, %v2224_v30, %v1856_v2  ;;  %1965 = vrot.lane.b32.xlu1 %v1950_v7, %s2982_s6 }
 0x235   : > { %1779 = vrot.lane.b32.xlu0 %v1759_v38, %s2975_s24 }
 0x236   : > { %v3716_v22 = vpop.permute.xlu1 %2185 }
 0x237   : > { %v3718_v47 = vpop.permute.xlu0 %2003 }
 0x238   : > { %1961 = vrot.lane.b32.xlu1 %v1936_v50, %s2982_s6 }
 0x239   : > { %2143 = vrot.lane.b32.xlu0 %v2113_v49, %s2984_s14 }
 0x23a   : > { %v1818_v63 = vpop.permute.xlu1 %1817 }
 0x23b   : > { %v2000_v39 = vpop.permute.xlu0 %1999 }
 0x23c   : > { %2193 = vrot.lane.b32.xlu1 %v2180_v56, %s2985_s17 }
 0x23d   : > { %2195 = vrot.lane.b32.xlu0 %v2181_v55, %s2985_s17 }
 0x23e   : > { %v1862_v21 = vpop.permute.xlu1 %1861 }
 0x23f   : > { %v2044_v1 = vpop.permute.xlu0 %2043 }
 0x240   : > { %2197 = vrot.lane.b32.xlu1 %v2182_v57, %s2985_s17 }
 0x242   : > { %v1774_v11 = vpop.permute.xlu1 %1773 }
 0x243   : > { %v1956_v23 = vpop.permute.xlu0 %1955  ;;  %v2210_v6 = vsel %vm1109_vm9, %v3504_v44, %v1774_v11 }
 0x244   : > { %v2230_v9 = vsel %vm1143_vm11, %v2210_v6, %v1822_v40 }
 0x245   : > { %v3732_v12 = vsel %vm1177_vm13, %v2230_v9, %v1862_v21 }
 0x246   : > { %v1858_v60 = vpop.permute.xlu1 %1857 }
 0x247   : > { %v2040_v29 = vpop.permute.xlu0 %2039 }
 0x24a   : > { %v2006_v18 = vpop.permute.xlu1 %2005 }
 0x24b   : > { %v2188_v17 = vpop.permute.xlu0 %2187 }
 0x24e   : > { %v2138_v8 = vpop.permute.xlu1 %2137 }
 0x24f   : > { %v3734_v13 = vpop.permute.xlu0 %1823 }
 0x252   : > { %v1770_v14 = vpop.permute.xlu1 %1769 }
 0x253   : > { %v1820_v19 = vpop.permute.xlu0 %1819  ;;  %v2204_v34 = vsel %vm1109_vm9, %v3525_v15, %v1770_v14 }
 0x254   : > { %v2226_v30 = vsel %vm1143_vm11, %v2204_v34, %v1818_v63 }
 0x255   : > { %v2242_v36 = vsel %vm1177_vm13, %v2226_v30, %v1858_v60 }
 0x256   : > { %v2002_v3 = vpop.permute.xlu1 %2001 }
 0x257   : > { %v1952_v20 = vpop.permute.xlu0 %1951 }
 0x258   : > { %v2256_v38 = vsel %vm1211_vm15, %v2240_v16, %v1952_v20 }
 0x259   : > { %v2273_v5 = vsel %vm2271_vm7, %v2256_v38, %v2000_v39 }
 0x25b   : > { %v2184_v25 = vpop.permute.xlu0 %2183 }
 0x26a   : > { %v3736_v26 = vpop.permute.xlu1 %2049 }
 0x26b   : > { %v3738_v44 = vpop.permute.xlu0 %1867 }
 0x26e   : > { %v1958_v54 = vpop.permute.xlu1 %1957 }
 0x26f   : > { %v2140_v43 = vpop.permute.xlu0 %2139 }
 0x272   : > { %v2046_v52 = vpop.permute.xlu1 %2045 }
 0x273   : > { %v1776_v33 = vpop.permute.xlu0 %1775 }
 0x276   : > { %v3742_v32 = vpop.permute.xlu1 %1829 }
 0x277   : > { %v1864_v24 = vpop.permute.xlu0 %1863 }
 0x27a   : > { %v1954_v0 = vpop.permute.xlu1 %1953 }
 0x27b   : > { %v3746_v40 = vpop.permute.xlu0 %2011  ;;  %v2258_v2 = vsel %vm1211_vm15, %v2242_v36, %v1954_v0 }
 0x27c   : > { %v2275_v7 = vsel %vm2271_vm7, %v2258_v2, %v2002_v3 }
 0x27d   : > { %v2292_v15 = vsel %vm2288_vm8, %v2275_v7, %v3706_v28  ;;  %v2290_v28 = vsel %vm2288_vm8, %v2273_v5, %v2040_v29 }
 0x27e   : > { %v2190_v46 = vpop.permute.xlu1 %2189  ;;  %v2309_v16 = vsel %vm2305_vm10, %v2292_v15, %v2138_v8 }
 0x27f   : > { %v1772_v4 = vpop.permute.xlu0 %1771  ;;  %v2326_v62 = vsel %vm2322_vm12, %v2309_v16, %v3716_v22  ;;  %v2262_v22 = vsel %vm1211_vm15, %v3732_v12, %v1958_v54  ;;  %v2213_v12 = vsel %vm1109_vm9, %v3580_v37, %v1776_v33 }
 0x280   : > { %v2207_v10 = vsel %vm1109_vm9, %v3606_v53, %v1772_v4  ;;  %v2279_v60 = vsel %vm2271_vm7, %v2262_v22, %v2006_v18 }
 0x281   : > { %v2228_v42 = vsel %vm1143_vm11, %v2207_v10, %v1820_v19  ;;  %v2296_v8 = vsel %vm2288_vm8, %v2279_v60, %v2046_v52  ;;  %v2232_v52 = vsel %vm1143_vm11, %v2213_v12, %v3734_v13 }
 0x282   : > { %v2244_v31 = vsel %vm1177_vm13, %v2228_v42, %v3708_v35  ;;  %v1826_v49 = vpop.permute.xlu1 %1825  ;;  %v2248_v30 = vsel %vm1177_vm13, %v2232_v52, %v1864_v24 }
 0x283   : > { %v2260_v58 = vsel %vm1211_vm15, %v2244_v31, %v1956_v23  ;;  %v2136_v50 = vpop.permute.xlu0 %2135 }
 0x284   : > { %v2277_v51 = vsel %vm2271_vm7, %v2260_v58, %v3718_v47  ;;  %v2307_v59 = vsel %vm2305_vm10, %v2290_v28, %v2136_v50 }
 0x285   : > { %v2324_v53 = vsel %vm2322_vm12, %v2307_v59, %v2184_v25  ;;  %v2294_v35 = vsel %vm2288_vm8, %v2277_v51, %v2044_v1 }
 0x286   : > { %v2735_v63 = vcombine.low %v2324_v53, %v2326_v62  ;;  %v2311_v39 = vsel %vm2305_vm10, %v2294_v35, %v2140_v43  ;;  %v1870_v55 = vpop.permute.xlu1 %1869 }
 0x287   : > { %v2008_v56 = vpop.permute.xlu0 %2007  ;;  %v2328_v57 = vsel %vm2322_vm12, %v2311_v39, %v2188_v17 }
 0x288   : > { %2799 = vmatprep.mubr.msk.bf16.mxu1 %vm2402_vm14, %v2735_v63 }
 0x28a   : > { %v1782_v47 = vpop.permute.xlu1 %1781 }
 0x28b   : > { %v2052_v21 = vpop.permute.xlu0 %2051  ;;  %v2222_v54 = vsel %vm1109_vm9, %v3631_v45, %v1782_v47 }
 0x28c   : > { %v2238_v0 = vsel %vm1143_vm11, %v2222_v54, %v3742_v32 }
 0x28d   : > { %v2254_v13 = vsel %vm1177_vm13, %v2238_v0, %v1870_v55 }
 0x28e   : > { %v1866_v11 = vpop.permute.xlu1 %1865 }
 0x28f   : > { %v1964_v23 = vpop.permute.xlu0 %1963 }
 0x292   : > { %v2014_v6 = vpop.permute.xlu1 %2013 }
 0x293   : > { %v2048_v9 = vpop.permute.xlu0 %2047 }
 0x296   : > { %v2146_v29 = vpop.permute.xlu1 %2145 }
 0x297   : > { %v1828_v1 = vpop.permute.xlu0 %1827 }
 0x29a   : > { %v2142_v19 = vpop.permute.xlu1 %2141 }
 0x29b   : > { %v1960_v14 = vpop.permute.xlu0 %1959  ;;  %v2313_v17 = vsel %vm2305_vm10, %v2296_v8, %v2142_v19 }
 0x29c   : > { %v2330_v20 = vsel %vm2322_vm12, %v2313_v17, %v2190_v46  ;;  %v2264_v2 = vsel %vm1211_vm15, %v2248_v30, %v1960_v14 }
 0x29d   : > { %v2736_v3 = vcombine.low %v2328_v57, %v2330_v20  ;;  %v2281_v7 = vsel %vm2271_vm7, %v2264_v2, %v2008_v56 }
 0x29e   : > { %v1778_v25 = vpop.permute.xlu1 %1777 }
 0x29f   : > { %v2192_v43 = vpop.permute.xlu0 %2191  ;;  %2800 = vmatmul.mubr.msk.bf16.vlgmr.msra.gmra.mxu1 %vm2402_vm14, %v2736_v3  ;;  %v2216_v36 = vsel %vm1109_vm9, %v3672_v27, %v1778_v25 }
 0x2a0   : > { %v2234_v33 = vsel %vm1143_vm11, %v2216_v36, %v1826_v49 }
 0x2a1   : > { %v2250_v46 = vsel %vm1177_vm13, %v2234_v33, %v1866_v11 }
 0x2a2   : > { %v2010_v18 = vpop.permute.xlu1 %2009 }
 0x2a3   : > { %v2148_v34 = vpop.permute.xlu0 %2147 }
 0x2a6   : > { %v1966_v38 = vpop.permute.xlu1 %1965 }
 0x2a7   : > { %v1780_v37 = vpop.permute.xlu0 %1779  ;;  %v2270_v27 = vsel %vm1211_vm15, %v2254_v13, %v1966_v38 }
 0x2a8   : > { %v2219_v45 = vsel %vm1109_vm9, %v3691_v61, %v1780_v37  ;;  %v2298_v61 = vsel %vm2288_vm8, %v2281_v7, %v2048_v9  ;;  %v2287_v31 = vsel %vm2271_vm7, %v2270_v27, %v2014_v6 }
 0x2a9   : > { %v2236_v24 = vsel %vm1143_vm11, %v2219_v45, %v1828_v1 }
 0x2aa   : > { %v2252_v32 = vsel %vm1177_vm13, %v2236_v24, %v3738_v44  ;;  %v1962_v4 = vpop.permute.xlu1 %1961 }
 0x2ab   : > { %v2268_v15 = vsel %vm1211_vm15, %v2252_v32, %v1964_v23  ;;  %v2144_v5 = vpop.permute.xlu0 %2143  ;;  %v2266_v10 = vsel %vm1211_vm15, %v2250_v46, %v1962_v4 }
 0x2ac   : > { %v2285_v42 = vsel %vm2271_vm7, %v2268_v15, %v3746_v40  ;;  %v2283_v16 = vsel %vm2271_vm7, %v2266_v10, %v2010_v18  ;;  %v2315_v58 = vsel %vm2305_vm10, %v2298_v61, %v2144_v5  ;;  %v2304_v40 = vsel %vm2288_vm8, %v2287_v31, %v3689_v48  ;;  %v2734_v48 = vld [vmem:[%s3839_s4] ss:$0 sm:$0xff] }
 0x2ad   : > { %v2300_v44 = vsel %vm2288_vm8, %v2283_v16, %v3736_v26  ;;  %v2302_v49 = vsel %vm2288_vm8, %v2285_v42, %v2052_v21  ;;  %v2332_v51 = vsel %vm2322_vm12, %v2315_v58, %v2192_v43  ;;  %v2321_v63 = vsel %vm2305_vm10, %v2304_v40, %v3699_v41 }
 0x2ae   : > { %v2317_v28 = vsel %vm2305_vm10, %v2300_v44, %v2146_v29  ;;  %v2194_v50 = vpop.permute.xlu1 %2193  ;;  %v2319_v62 = vsel %vm2305_vm10, %v2302_v49, %v2148_v34 }
 0x2af   : > { %v2334_v59 = vsel %vm2322_vm12, %v2317_v28, %v2194_v50  ;;  %v2196_v35 = vpop.permute.xlu0 %2195 }
 0x2b0   : > { %v2737_v53 = vcombine.low %v2332_v51, %v2334_v59  ;;  %v2336_v39 = vsel %vm2322_vm12, %v2319_v62, %v2196_v35 }
 0x2b2   : > { %v2198_v26 = vpop.permute.xlu1 %2197  ;;  %2803 = vmatprep.mubr.msk.bf16.mxu1 %vm2402_vm14, %v2737_v53 }
 0x2b3   : > { %v2338_v55 = vsel %vm2322_vm12, %v2321_v63, %v2198_v26 }
 0x2b4   : > { %v2738_v56 = vcombine.low %v2336_v39, %v2338_v55 }
 0x2b6   : > { %2804 = vmatmul.mubr.msk.bf16.gmra.mxu1 %vm2402_vm14, %v2738_v56 }
 0x35f   : > { %v2801_v57 = vpop.f32.mrf.mxu1 }
 0x360   : > { %v2462_v9 = vadd.f32 %v2801_v57, %v2734_v48 }
 0x361   : > { %v2453_v47 = vpop.f32.mrf.mxu1 }
 0x362   : > { %v2454_v21 = vadd.f32 %v2734_v48, %v2453_v47  ;;  %v2486_v29 = vmax.f32 %v2462_v9, 0.0 }
 0x363   : > { %v2802_v11 = vpop.f32.mrf.mxu1 }
 0x364   : > { %v2484_v23 = vmax.f32 %v2454_v21, 0.0  ;;  %v2465_v1 = vadd.f32 %v2802_v11, %v2734_v48 }
 0x365   : > { %v2456_v41 = vpop.f32.mrf.mxu1 }
 0x366   : > { %v2457_v6 = vadd.f32 %v2734_v48, %v2456_v41  ;;  %2492 = vxpose.xlu0.b32.start [1/8] (short) (narrow) %v2484_v23, 8  ;;  %v2487_v60 = vmax.f32 %v2465_v1, 0.0 }
 0x368   : > { %v2485_v22 = vmax.f32 %v2457_v6, 0.0 }
 0x36a   : > { %2493 = vxpose.xlu0.b32.cont [2/8] (short) (narrow) %v2485_v22, 8 }
 0x36e   : > { %2494 = vxpose.xlu0.b32.cont [3/8] (short) (narrow) %v2486_v29, 8 }
 0x372   : > { %2495 = vxpose.xlu0.b32.cont [4/8] (short) (narrow) %v2487_v60, 8 }
 0x376   : > { %v2805_v8 = vpop.f32.mrf.mxu1 }
 0x377   : > { %v2478_v43 = vadd.f32 %v2805_v8, %v2734_v48 }
 0x378   : > { %v2469_v19 = vpop.f32.mrf.mxu1 }
 0x379   : > { %v2470_v14 = vadd.f32 %v2734_v48, %v2469_v19  ;;  %v2490_v54 = vmax.f32 %v2478_v43, 0.0 }
 0x37a   : > { %v2806_v17 = vpop.f32.mrf.mxu1 }
 0x37b   : > { %v2488_v20 = vmax.f32 %v2470_v14, 0.0  ;;  %v2481_v18 = vadd.f32 %v2806_v17, %v2734_v48 }
 0x37c   : > { %v2472_v3 = vpop.f32.mrf.mxu1 }
 0x37d   : > { %v2473_v25 = vadd.f32 %v2734_v48, %v2472_v3  ;;  %2496 = vxpose.xlu0.b32.cont [5/8] (short) (narrow) %v2488_v20, 8  ;;  %v2491_v34 = vmax.f32 %v2481_v18, 0.0 }
 0x37f   : > { %v2489_v12 = vmax.f32 %v2473_v25, 0.0 }
 0x381   : > { %2497 = vxpose.xlu0.b32.cont [6/8] (short) (narrow) %v2489_v12, 8 }
 0x385   : > { %2498 = vxpose.xlu0.b32.cont [7/8] (short) (narrow) %v2490_v54, 8 }
 0x389   : > { %2499 = vxpose.xlu0.b32.end [8/8] (short) (narrow) %v2491_v34, 8 }
 0x3e9   : > { %v2508_v52 = vpop.trf.xlu0 }
 0x3ea   : > { %2524 = vst.msk [vmem:[%s222_s11] sm:$0xff] %vm2322_vm12, %v2508_v52 }
 0x3eb PF: > { %s15_s18 = sadd.s32 1, %s2972_s18  }
 0x3ec   : > { %p12_p4 = scmp.ge.s32.totalorder %s15_s18, 4  }
 0x3ee   :  { %14 = sbr.rel (!%p12_p4) target bundleno = 1 (0x1), region = 76 }

</bundles_post_ra>
